<compile_context>
chip_gen: v7x
topology: tpu7x:2x2x1
jax: 0.10.0
libtpu: 0.0.40
codegen_flags: <defaults>
</compile_context>

<pallas_src>
import math

import jax
import jax.numpy as jnp
from jax.experimental import pallas as pl
from jax.experimental.pallas import tpu as pltpu


def _rup(n, m):
    return ((n + m - 1) // m) * m


# ----------------------------------------------------------------------------- config
def make_config():
    return dict(
        horizon_size=4,
        hidden_size=32,
        quantiles=[0.1, 0.5, 0.9],
        dropout=0.0,
        layer_size=2,
        b_direction=False,
        batch_size=1,          # forward() only works for batch_size == 1
        context_size=8,
        covariate_size=3,
        seq_len=8,
    )


# ----------------------------------------------------------------------------- params
def init_params(key, cfg):
    """Deterministic parameter init (PyTorch-style uniform bounds), float32."""
    H = cfg["horizon_size"]
    hid = cfg["hidden_size"]
    cov = cfg["covariate_size"]
    ctx = cfg["context_size"]
    L = cfg["layer_size"]
    Q = len(cfg["quantiles"])
    Dg = H * hid                       # global-decoder hidden width
    Dl = H * Q                         # local-decoder hidden width

    keys = iter(jax.random.split(key, 64))

    def u(shape, bound):
        return jax.random.uniform(next(keys), shape, jnp.float32, -bound, bound)

    params = []

    # --- Encoder: stacked unidirectional LSTM (gate order i, f, g, o) ---
    k_lstm = 1.0 / math.sqrt(hid)
    for l in range(L):
        in_l = (1 + cov) if l == 0 else hid
        params += [
            u((in_l, 4 * hid), k_lstm),   # w_ih (already transposed for x @ W)
            u((hid, 4 * hid), k_lstm),    # w_hh
            u((1, 4 * hid), k_lstm),      # b_ih
            u((1, 4 * hid), k_lstm),      # b_hh
        ]

    # --- GlobalDecoder: 3 x (Linear + ReLU) on cat([lstm_out, next_cov]) ---
    in1 = hid + H * cov
    k1 = 1.0 / math.sqrt(in1)
    k2 = 1.0 / math.sqrt(Dg)
    params += [
        u((hid, Dg), k1),                # gW1 (hidden part)
        u((H * cov, Dg), k1),            # gW1 (covariate part)
        u((1, Dg), k1),                  # gb1
        u((Dg, Dg), k2),                 # gW2
        u((1, Dg), k2),                  # gb2
        u((Dg, (H + 1) * ctx), k2),      # gW3
        u((1, (H + 1) * ctx), k2),       # gb3
    ]

    # --- LocalDecoder: Linear + ReLU + Linear on cat([agnostic, specific, cov]) ---
    in_l1 = 2 * ctx + cov
    kl1 = 1.0 / math.sqrt(in_l1)
    kl2 = 1.0 / math.sqrt(Dl)
    params += [
        u((ctx, Dl), kl1),               # lW1 (horizon-agnostic context part)
        u((ctx, Dl), kl1),               # lW1 (horizon-specific context part)
        u((cov, Dl), kl1),               # lW1 (covariate part)
        u((1, Dl), kl1),                 # lb1
        u((Dl, Q), kl2),                 # lW2
        u((1, Q), kl2),                  # lb2
    ]
    return params


# ----------------------------------------------------------------------------- kernel
def make_mqrnn_forward(cfg):
    H = cfg["horizon_size"]
    hid = cfg["hidden_size"]
    cov = cfg["covariate_size"]
    ctx = cfg["context_size"]
    L = cfg["layer_size"]
    Q = len(cfg["quantiles"])
    S = cfg["seq_len"]
    Dg = H * hid
    Dl = H * Q

    IN0 = _rup(1 + cov, 8)          # padded x feature width (sublane-aligned weight rows)
    NCP = _rup(H * cov, 8)          # padded next-covariate width
    LANES = _rup(max(4 * hid, Dg, (H + 1) * ctx, H * Dl, H * Q, hid, IN0, NCP), 128)

    # ---- single-slab segment layout (all segments LANES wide, rows multiple of 8) ----
    seg_defs = []
    for l in range(L):
        seg_defs.append((f"w_ih{l}", IN0 if l == 0 else _rup(hid, 8)))
        seg_defs.append((f"w_hh{l}", _rup(hid, 8)))
        seg_defs.append((f"b{l}", 8))
    seg_defs += [
        ("gW1h", _rup(hid, 8)), ("gW1c", NCP), ("gb1", 8),
        ("gW2", LANES), ("gb2", 8),
        ("gW3", LANES), ("gb3", 8),
        ("Wgz", LANES), ("lW1c", NCP), ("lb1", 8),
        ("lW2", LANES), ("lb2", 8),
    ]
    offs = {}
    _r = 0
    for _name, _rows in seg_defs:
        offs[_name] = (_r, _rows)
        _r += _rows
    TOTAL_ROWS = _r

    # ------------------------------------------------------------------ kernel body
    def kernel(x_ref, nc_ref, w_ref, out_ref):
        def seg(name, rows):
            r0, _ = offs[name]
            return w_ref[r0:r0 + rows, :]          # static slice of the weight slab

        x = x_ref[...]                             # (S, IN0)   zero-padded columns
        nc = nc_ref[...]                           # (S, NCP)

        # ---- Encoder: stacked LSTM, wavefronted (time outer, layers inner) ----
        # Layer-0 input projection hoisted (x known upfront; off serial path, f32).
        x_proj0 = (jnp.dot(x, seg("w_ih0", IN0), preferred_element_type=jnp.float32)
                   + seg("b0", 1))                 # (S, LANES), bias folded + pre-scaled

        # Recurrent weights cast to bf16 once (hoisted out of the time loop).
        w_hh_b = [seg(f"w_hh{l}", hid).astype(jnp.bfloat16) for l in range(L)]
        w_ih_b = [None] + [seg(f"w_ih{l}", hid).astype(jnp.bfloat16) for l in range(1, L)]
        bias_l = [None] + [seg(f"b{l}", 1) for l in range(1, L)]

        h = [jnp.zeros((1, hid), jnp.float32) for _ in range(L)]
        c = [jnp.zeros((1, hid), jnp.float32) for _ in range(L)]
        hs = []
        for t in range(S):
            for l in range(L):
                if l == 0:
                    pre = x_proj0[t:t + 1, :] + jnp.dot(
                        h[0].astype(jnp.bfloat16), w_hh_b[0],
                        preferred_element_type=jnp.float32)
                else:
                    # Per-step input projection: layer-l step t depends only on
                    # layer-(l-1) step t and h[l] at t-1 (no layer barrier).
                    pre = (bias_l[l]
                           + jnp.dot(h[l - 1].astype(jnp.bfloat16), w_ih_b[l],
                                     preferred_element_type=jnp.float32)
                           + jnp.dot(h[l].astype(jnp.bfloat16), w_hh_b[l],
                                     preferred_element_type=jnp.float32))
                # i/f/o columns of W/b were pre-scaled by 0.5 at pack time, so a
                # single tanh gives: tanh(0.5*a) for i,f,o and tanh(a) for g.
                th = jnp.tanh(pre)
                i_g = 0.5 * th[:, 0 * hid:1 * hid] + 0.5     # = sigmoid(a_i)
                f_g = 0.5 * th[:, 1 * hid:2 * hid] + 0.5     # = sigmoid(a_f)
                g_g = th[:, 2 * hid:3 * hid]                 # = tanh(a_g)
                o_g = 0.5 * th[:, 3 * hid:4 * hid] + 0.5     # = sigmoid(a_o)
                c[l] = f_g * c[l] + i_g * g_g
                h[l] = o_g * jnp.tanh(c[l])
            hs.append(h[L - 1])
        lstm_out = jnp.concatenate(hs, axis=0)               # (S, hid)

        # ---- GlobalDecoder: 3 x (Linear + ReLU); concat replaced by split matmuls ----
        z1 = jnp.maximum(
            jnp.dot(lstm_out, seg("gW1h", hid), preferred_element_type=jnp.float32)
            + jnp.dot(nc, seg("gW1c", NCP), preferred_element_type=jnp.float32)
            + seg("gb1", 1), 0.0)
        z2 = jnp.maximum(
            jnp.dot(z1, seg("gW2", LANES), preferred_element_type=jnp.float32)
            + seg("gb2", 1), 0.0)
        g = jnp.maximum(
            jnp.dot(z2, seg("gW3", LANES), preferred_element_type=jnp.float32)
            + seg("gb3", 1), 0.0)
        # g: (S, LANES); cols [0:H*ctx]=horizon-specific, [H*ctx:(H+1)*ctx]=agnostic,
        # remaining padded cols are exactly 0 (zero weight cols + zero bias + ReLU).

        # ---- LocalDecoder: all horizons at once; agnostic/specific merged into one
        #      stacked weight (Wgz), no lane slicing of g needed ----
        z = jnp.maximum(
            jnp.dot(g, seg("Wgz", LANES), preferred_element_type=jnp.float32)
            + jnp.dot(nc, seg("lW1c", NCP), preferred_element_type=jnp.float32)
            + seg("lb1", 1), 0.0)                                          # (S, LANES)
        q = (jnp.dot(z, seg("lW2", LANES), preferred_element_type=jnp.float32)
             + seg("lb2", 1))                                              # (S, LANES)
        out_ref[...] = q           # lane-dense full-vreg store; real data in [:, :H*Q]

    fwd_call = pl.pallas_call(
        kernel,
        out_shape=jax.ShapeDtypeStruct((S, LANES), jnp.float32),
        in_specs=[pl.BlockSpec(memory_space=pltpu.MemorySpace.VMEM)] * 3,
        out_specs=pl.BlockSpec(memory_space=pltpu.MemorySpace.VMEM),
        compiler_params=pltpu.CompilerParams(vmem_limit_bytes=16 * 1024 * 1024),
    )

    # ------------------------------------------------------------------ weight packing
    def pack_params(params):
        """One-time packing of all weights into a single (TOTAL_ROWS, LANES) f32 slab.

        Call once, outside the per-call jitted forward.  Includes bias folding
        (b_ih+b_hh), the 0.5 pre-scale of i/f/o gate columns (tanh-sigmoid
        identity), horizon tiling / block-diagonalisation of the local decoder,
        and zero-padding of every segment to (8k, LANES).
        """
        segs = {}
        pos = 0
        gate_scale = jnp.concatenate([
            jnp.full((hid,), 0.5, jnp.float32),
            jnp.full((hid,), 0.5, jnp.float32),
            jnp.ones((hid,), jnp.float32),
            jnp.full((hid,), 0.5, jnp.float32)])            # (4*hid,)
        for l in range(L):
            w_ih, w_hh, b_ih, b_hh = params[pos:pos + 4]
            pos += 4
            segs[f"w_ih{l}"] = w_ih * gate_scale[None, :]
            segs[f"w_hh{l}"] = w_hh * gate_scale[None, :]
            segs[f"b{l}"] = (b_ih + b_hh) * gate_scale[None, :]

        gW1h, gW1c, gb1, gW2, gb2, gW3, gb3 = params[pos:pos + 7]
        pos += 7
        segs.update(gW1h=gW1h, gW1c=gW1c, gb1=gb1, gW2=gW2, gb2=gb2, gW3=gW3, gb3=gb3)

        lW1a, lW1s, lW1c, lb1, lW2, lb2 = params[pos:pos + 6]
        lW1a_t = jnp.tile(lW1a, (1, H))                                  # (ctx, H*Dl)
        lW1s_bd = jax.scipy.linalg.block_diag(*([lW1s] * H))             # (H*ctx, H*Dl)
        # rows 0..H*ctx-1 hit g's specific cols, rows H*ctx.. hit the agnostic cols
        segs["Wgz"] = jnp.concatenate([lW1s_bd, lW1a_t], axis=0)         # ((H+1)*ctx, H*Dl)
        segs["lW1c"] = jax.scipy.linalg.block_diag(*([lW1c] * H))        # (H*cov, H*Dl)
        segs["lb1"] = jnp.tile(lb1, (1, H))                              # (1, H*Dl)
        segs["lW2"] = jax.scipy.linalg.block_diag(*([lW2] * H))          # (H*Dl, H*Q)
        segs["lb2"] = jnp.tile(lb2, (1, H))                              # (1, H*Q)

        parts = []
        for name, rows in seg_defs:
            a = segs[name].astype(jnp.float32)
            parts.append(jnp.pad(a, ((0, rows - a.shape[0]), (0, LANES - a.shape[1]))))
        slab = jnp.concatenate(parts, axis=0)
        assert slab.shape == (TOTAL_ROWS, LANES)
        return slab

    # ------------------------------------------------------------------ forward
    @jax.jit
    def forward(weight_slab, cur_series_covariate, next_covariate):
        # cur_series_covariate: (S, 1, 1+cov); next_covariate: (S, 1, H*cov)
        x2 = cur_series_covariate.reshape(S, 1 + cov).astype(jnp.float32)
        nc2 = next_covariate.reshape(S, H * cov).astype(jnp.float32)
        x2 = jnp.pad(x2, ((0, 0), (0, IN0 - (1 + cov))))
        nc2 = jnp.pad(nc2, ((0, 0), (0, NCP - H * cov)))
        out_pad = fwd_call(x2, nc2, weight_slab)             # (S, LANES)
        return out_pad[:, :H * Q].reshape(S, 1, H, Q)        # (seq, batch, horizon, quantiles)

    return forward, pack_params


# ----------------------------------------------------------------------------- main
if __name__ == "__main__":
    cfg = make_config()
    S = cfg["seq_len"]
    H = cfg["horizon_size"]
    cov = cfg["covariate_size"]
    Q = len(cfg["quantiles"])

    key = jax.random.PRNGKey(0)
    kp, kx, kn = jax.random.split(key, 3)

    params = init_params(kp, cfg)
    cur_series_covariate = jax.random.normal(kx, (S, 1, 1 + cov), jnp.float32)
    next_covariate = jax.random.normal(kn, (S, 1, H * cov), jnp.float32)

    forward, pack_params = make_mqrnn_forward(cfg)
    # One-time weight packing (bias fold, gate pre-scale, tiling, block-diag, padding)
    # kept OUTSIDE the per-call jitted forward, then reused for every call.
    weight_slab = jax.block_until_ready(pack_params(params))

    out = forward(weight_slab, cur_series_covariate, next_covariate)
    out = jax.block_until_ready(out)

    assert out.shape == (S, 1, H, Q), out.shape
    assert bool(jnp.all(jnp.isfinite(out)))
    print("KERNEL_OK")
</pallas_src>

<mosaic_0001>
module attributes {stable_mosaic.version = 11 : i64} {
  func.func @kernel(%arg0: memref<8x8xf32, #tpu.memory_space<vmem>>, %arg1: memref<8x16xf32, #tpu.memory_space<vmem>>, %arg2: memref<736x128xf32, #tpu.memory_space<vmem>>, %arg3: memref<8x128xf32, #tpu.memory_space<vmem>>) attributes {dimension_semantics = [], scalar_prefetch = 0 : i64, scratch_operands = 0 : i64, tpu.core_type = #tpu.core_type<tc>} {
    %c0 = arith.constant 0 : index
    %c0_0 = arith.constant 0 : index
    %0 = vector.load %arg0[%c0, %c0_0] : memref<8x8xf32, #tpu.memory_space<vmem>>, vector<8x8xf32>
    %c0_1 = arith.constant 0 : index
    %c0_2 = arith.constant 0 : index
    %1 = vector.load %arg1[%c0_1, %c0_2] : memref<8x16xf32, #tpu.memory_space<vmem>>, vector<8x16xf32>
    %c0_3 = arith.constant 0 : index
    %c0_4 = arith.constant 0 : index
    %2 = vector.load %arg2[%c0_3, %c0_4] : memref<736x128xf32, #tpu.memory_space<vmem>>, vector<8x128xf32>
    %cst = arith.constant dense<0.000000e+00> : vector<8x128xf32>
    %3 = tpu.matmul %0, %2, %cst {dimension_numbers = #tpu.dot_dimension_numbers<[1], [0], [0], [1], [0, 0, 1, 1], [], []>} : vector<8x8xf32>, vector<8x128xf32>, vector<8x128xf32> -> vector<8x128xf32>
    %c40 = arith.constant 40 : index
    %c0_5 = arith.constant 0 : index
    %4 = vector.load %arg2[%c40, %c0_5] : memref<736x128xf32, #tpu.memory_space<vmem>>, vector<1x128xf32>
    %5 = vector.broadcast %4 : vector<1x128xf32> to vector<8x128xf32>
    %6 = arith.addf %3, %5 : vector<8x128xf32>
    %c8 = arith.constant 8 : index
    %c0_6 = arith.constant 0 : index
    %7 = vector.load %arg2[%c8, %c0_6] : memref<736x128xf32, #tpu.memory_space<vmem>>, vector<32x128xf32>
    %8 = arith.truncf %7 : vector<32x128xf32> to vector<32x128xbf16>
    %c80 = arith.constant 80 : index
    %c0_7 = arith.constant 0 : index
    %9 = vector.load %arg2[%c80, %c0_7] : memref<736x128xf32, #tpu.memory_space<vmem>>, vector<32x128xf32>
    %10 = arith.truncf %9 : vector<32x128xf32> to vector<32x128xbf16>
    %c48 = arith.constant 48 : index
    %c0_8 = arith.constant 0 : index
    %11 = vector.load %arg2[%c48, %c0_8] : memref<736x128xf32, #tpu.memory_space<vmem>>, vector<32x128xf32>
    %12 = arith.truncf %11 : vector<32x128xf32> to vector<32x128xbf16>
    %c112 = arith.constant 112 : index
    %c0_9 = arith.constant 0 : index
    %13 = vector.load %arg2[%c112, %c0_9] : memref<736x128xf32, #tpu.memory_space<vmem>>, vector<1x128xf32>
    %cst_10 = arith.constant 0.000000e+00 : f32
    %14 = vector.broadcast %cst_10 : f32 to vector<1x32xf32>
    %cst_11 = arith.constant 0.000000e+00 : f32
    %15 = vector.broadcast %cst_11 : f32 to vector<1x32xf32>
    %cst_12 = arith.constant 0.000000e+00 : f32
    %16 = vector.broadcast %cst_12 : f32 to vector<1x32xf32>
    %cst_13 = arith.constant 0.000000e+00 : f32
    %17 = vector.broadcast %cst_13 : f32 to vector<1x32xf32>
    %18 = vector.extract_strided_slice %6 {offsets = [0, 0], sizes = [1, 128], strides = [1, 1]} : vector<8x128xf32> to vector<1x128xf32>
    %19 = arith.truncf %14 : vector<1x32xf32> to vector<1x32xbf16>
    %cst_14 = arith.constant dense<0.000000e+00> : vector<1x128xf32>
    %20 = tpu.matmul %19, %8, %cst_14 {dimension_numbers = #tpu.dot_dimension_numbers<[1], [0], [0], [1], [0, 0, 1, 1], [], []>} : vector<1x32xbf16>, vector<32x128xbf16>, vector<1x128xf32> -> vector<1x128xf32>
    %21 = arith.addf %18, %20 : vector<1x128xf32>
    %22 = math.tanh %21 : vector<1x128xf32>
    %23 = vector.extract_strided_slice %22 {offsets = [0, 0], sizes = [1, 32], strides = [1, 1]} : vector<1x128xf32> to vector<1x32xf32>
    %cst_15 = arith.constant 5.000000e-01 : f32
    %24 = vector.broadcast %cst_15 : f32 to vector<1x32xf32>
    %25 = arith.mulf %24, %23 : vector<1x32xf32>
    %cst_16 = arith.constant 5.000000e-01 : f32
    %26 = vector.broadcast %cst_16 : f32 to vector<1x32xf32>
    %27 = arith.addf %25, %26 : vector<1x32xf32>
    %28 = vector.extract_strided_slice %22 {offsets = [0, 32], sizes = [1, 32], strides = [1, 1]} : vector<1x128xf32> to vector<1x32xf32>
    %cst_17 = arith.constant 5.000000e-01 : f32
    %29 = vector.broadcast %cst_17 : f32 to vector<1x32xf32>
    %30 = arith.mulf %29, %28 : vector<1x32xf32>
    %cst_18 = arith.constant 5.000000e-01 : f32
    %31 = vector.broadcast %cst_18 : f32 to vector<1x32xf32>
    %32 = arith.addf %30, %31 : vector<1x32xf32>
    %33 = vector.extract_strided_slice %22 {offsets = [0, 64], sizes = [1, 32], strides = [1, 1]} : vector<1x128xf32> to vector<1x32xf32>
    %34 = vector.extract_strided_slice %22 {offsets = [0, 96], sizes = [1, 32], strides = [1, 1]} : vector<1x128xf32> to vector<1x32xf32>
    %cst_19 = arith.constant 5.000000e-01 : f32
    %35 = vector.broadcast %cst_19 : f32 to vector<1x32xf32>
    %36 = arith.mulf %35, %34 : vector<1x32xf32>
    %cst_20 = arith.constant 5.000000e-01 : f32
    %37 = vector.broadcast %cst_20 : f32 to vector<1x32xf32>
    %38 = arith.addf %36, %37 : vector<1x32xf32>
    %39 = arith.mulf %32, %16 : vector<1x32xf32>
    %40 = arith.mulf %27, %33 : vector<1x32xf32>
    %41 = arith.addf %39, %40 : vector<1x32xf32>
    %42 = math.tanh %41 : vector<1x32xf32>
    %43 = arith.mulf %38, %42 : vector<1x32xf32>
    %44 = arith.truncf %43 : vector<1x32xf32> to vector<1x32xbf16>
    %cst_21 = arith.constant dense<0.000000e+00> : vector<1x128xf32>
    %45 = tpu.matmul %44, %12, %cst_21 {dimension_numbers = #tpu.dot_dimension_numbers<[1], [0], [0], [1], [0, 0, 1, 1], [], []>} : vector<1x32xbf16>, vector<32x128xbf16>, vector<1x128xf32> -> vector<1x128xf32>
    %46 = arith.addf %13, %45 : vector<1x128xf32>
    %47 = arith.truncf %15 : vector<1x32xf32> to vector<1x32xbf16>
    %cst_22 = arith.constant dense<0.000000e+00> : vector<1x128xf32>
    %48 = tpu.matmul %47, %10, %cst_22 {dimension_numbers = #tpu.dot_dimension_numbers<[1], [0], [0], [1], [0, 0, 1, 1], [], []>} : vector<1x32xbf16>, vector<32x128xbf16>, vector<1x128xf32> -> vector<1x128xf32>
    %49 = arith.addf %46, %48 : vector<1x128xf32>
    %50 = math.tanh %49 : vector<1x128xf32>
    %51 = vector.extract_strided_slice %50 {offsets = [0, 0], sizes = [1, 32], strides = [1, 1]} : vector<1x128xf32> to vector<1x32xf32>
    %cst_23 = arith.constant 5.000000e-01 : f32
    %52 = vector.broadcast %cst_23 : f32 to vector<1x32xf32>
    %53 = arith.mulf %52, %51 : vector<1x32xf32>
    %cst_24 = arith.constant 5.000000e-01 : f32
    %54 = vector.broadcast %cst_24 : f32 to vector<1x32xf32>
    %55 = arith.addf %53, %54 : vector<1x32xf32>
    %56 = vector.extract_strided_slice %50 {offsets = [0, 32], sizes = [1, 32], strides = [1, 1]} : vector<1x128xf32> to vector<1x32xf32>
    %cst_25 = arith.constant 5.000000e-01 : f32
    %57 = vector.broadcast %cst_25 : f32 to vector<1x32xf32>
    %58 = arith.mulf %57, %56 : vector<1x32xf32>
    %cst_26 = arith.constant 5.000000e-01 : f32
    %59 = vector.broadcast %cst_26 : f32 to vector<1x32xf32>
    %60 = arith.addf %58, %59 : vector<1x32xf32>
    %61 = vector.extract_strided_slice %50 {offsets = [0, 64], sizes = [1, 32], strides = [1, 1]} : vector<1x128xf32> to vector<1x32xf32>
    %62 = vector.extract_strided_slice %50 {offsets = [0, 96], sizes = [1, 32], strides = [1, 1]} : vector<1x128xf32> to vector<1x32xf32>
    %cst_27 = arith.constant 5.000000e-01 : f32
    %63 = vector.broadcast %cst_27 : f32 to vector<1x32xf32>
    %64 = arith.mulf %63, %62 : vector<1x32xf32>
    %cst_28 = arith.constant 5.000000e-01 : f32
    %65 = vector.broadcast %cst_28 : f32 to vector<1x32xf32>
    %66 = arith.addf %64, %65 : vector<1x32xf32>
    %67 = arith.mulf %60, %17 : vector<1x32xf32>
    %68 = arith.mulf %55, %61 : vector<1x32xf32>
    %69 = arith.addf %67, %68 : vector<1x32xf32>
    %70 = math.tanh %69 : vector<1x32xf32>
    %71 = arith.mulf %66, %70 : vector<1x32xf32>
    %72 = vector.extract_strided_slice %6 {offsets = [1, 0], sizes = [1, 128], strides = [1, 1]} : vector<8x128xf32> to vector<1x128xf32>
    %73 = arith.truncf %43 : vector<1x32xf32> to vector<1x32xbf16>
    %cst_29 = arith.constant dense<0.000000e+00> : vector<1x128xf32>
    %74 = tpu.matmul %73, %8, %cst_29 {dimension_numbers = #tpu.dot_dimension_numbers<[1], [0], [0], [1], [0, 0, 1, 1], [], []>} : vector<1x32xbf16>, vector<32x128xbf16>, vector<1x128xf32> -> vector<1x128xf32>
    %75 = arith.addf %72, %74 : vector<1x128xf32>
    %76 = math.tanh %75 : vector<1x128xf32>
    %77 = vector.extract_strided_slice %76 {offsets = [0, 0], sizes = [1, 32], strides = [1, 1]} : vector<1x128xf32> to vector<1x32xf32>
    %cst_30 = arith.constant 5.000000e-01 : f32
    %78 = vector.broadcast %cst_30 : f32 to vector<1x32xf32>
    %79 = arith.mulf %78, %77 : vector<1x32xf32>
    %cst_31 = arith.constant 5.000000e-01 : f32
    %80 = vector.broadcast %cst_31 : f32 to vector<1x32xf32>
    %81 = arith.addf %79, %80 : vector<1x32xf32>
    %82 = vector.extract_strided_slice %76 {offsets = [0, 32], sizes = [1, 32], strides = [1, 1]} : vector<1x128xf32> to vector<1x32xf32>
    %cst_32 = arith.constant 5.000000e-01 : f32
    %83 = vector.broadcast %cst_32 : f32 to vector<1x32xf32>
    %84 = arith.mulf %83, %82 : vector<1x32xf32>
    %cst_33 = arith.constant 5.000000e-01 : f32
    %85 = vector.broadcast %cst_33 : f32 to vector<1x32xf32>
    %86 = arith.addf %84, %85 : vector<1x32xf32>
    %87 = vector.extract_strided_slice %76 {offsets = [0, 64], sizes = [1, 32], strides = [1, 1]} : vector<1x128xf32> to vector<1x32xf32>
    %88 = vector.extract_strided_slice %76 {offsets = [0, 96], sizes = [1, 32], strides = [1, 1]} : vector<1x128xf32> to vector<1x32xf32>
    %cst_34 = arith.constant 5.000000e-01 : f32
    %89 = vector.broadcast %cst_34 : f32 to vector<1x32xf32>
    %90 = arith.mulf %89, %88 : vector<1x32xf32>
    %cst_35 = arith.constant 5.000000e-01 : f32
    %91 = vector.broadcast %cst_35 : f32 to vector<1x32xf32>
    %92 = arith.addf %90, %91 : vector<1x32xf32>
    %93 = arith.mulf %86, %41 : vector<1x32xf32>
    %94 = arith.mulf %81, %87 : vector<1x32xf32>
    %95 = arith.addf %93, %94 : vector<1x32xf32>
    %96 = math.tanh %95 : vector<1x32xf32>
    %97 = arith.mulf %92, %96 : vector<1x32xf32>
    %98 = arith.truncf %97 : vector<1x32xf32> to vector<1x32xbf16>
    %cst_36 = arith.constant dense<0.000000e+00> : vector<1x128xf32>
    %99 = tpu.matmul %98, %12, %cst_36 {dimension_numbers = #tpu.dot_dimension_numbers<[1], [0], [0], [1], [0, 0, 1, 1], [], []>} : vector<1x32xbf16>, vector<32x128xbf16>, vector<1x128xf32> -> vector<1x128xf32>
    %100 = arith.addf %13, %99 : vector<1x128xf32>
    %101 = arith.truncf %71 : vector<1x32xf32> to vector<1x32xbf16>
    %cst_37 = arith.constant dense<0.000000e+00> : vector<1x128xf32>
    %102 = tpu.matmul %101, %10, %cst_37 {dimension_numbers = #tpu.dot_dimension_numbers<[1], [0], [0], [1], [0, 0, 1, 1], [], []>} : vector<1x32xbf16>, vector<32x128xbf16>, vector<1x128xf32> -> vector<1x128xf32>
    %103 = arith.addf %100, %102 : vector<1x128xf32>
    %104 = math.tanh %103 : vector<1x128xf32>
    %105 = vector.extract_strided_slice %104 {offsets = [0, 0], sizes = [1, 32], strides = [1, 1]} : vector<1x128xf32> to vector<1x32xf32>
    %cst_38 = arith.constant 5.000000e-01 : f32
    %106 = vector.broadcast %cst_38 : f32 to vector<1x32xf32>
    %107 = arith.mulf %106, %105 : vector<1x32xf32>
    %cst_39 = arith.constant 5.000000e-01 : f32
    %108 = vector.broadcast %cst_39 : f32 to vector<1x32xf32>
    %109 = arith.addf %107, %108 : vector<1x32xf32>
    %110 = vector.extract_strided_slice %104 {offsets = [0, 32], sizes = [1, 32], strides = [1, 1]} : vector<1x128xf32> to vector<1x32xf32>
    %cst_40 = arith.constant 5.000000e-01 : f32
    %111 = vector.broadcast %cst_40 : f32 to vector<1x32xf32>
    %112 = arith.mulf %111, %110 : vector<1x32xf32>
    %cst_41 = arith.constant 5.000000e-01 : f32
    %113 = vector.broadcast %cst_41 : f32 to vector<1x32xf32>
    %114 = arith.addf %112, %113 : vector<1x32xf32>
    %115 = vector.extract_strided_slice %104 {offsets = [0, 64], sizes = [1, 32], strides = [1, 1]} : vector<1x128xf32> to vector<1x32xf32>
    %116 = vector.extract_strided_slice %104 {offsets = [0, 96], sizes = [1, 32], strides = [1, 1]} : vector<1x128xf32> to vector<1x32xf32>
    %cst_42 = arith.constant 5.000000e-01 : f32
    %117 = vector.broadcast %cst_42 : f32 to vector<1x32xf32>
    %118 = arith.mulf %117, %116 : vector<1x32xf32>
    %cst_43 = arith.constant 5.000000e-01 : f32
    %119 = vector.broadcast %cst_43 : f32 to vector<1x32xf32>
    %120 = arith.addf %118, %119 : vector<1x32xf32>
    %121 = arith.mulf %114, %69 : vector<1x32xf32>
    %122 = arith.mulf %109, %115 : vector<1x32xf32>
    %123 = arith.addf %121, %122 : vector<1x32xf32>
    %124 = math.tanh %123 : vector<1x32xf32>
    %125 = arith.mulf %120, %124 : vector<1x32xf32>
    %126 = vector.extract_strided_slice %6 {offsets = [2, 0], sizes = [1, 128], strides = [1, 1]} : vector<8x128xf32> to vector<1x128xf32>
    %127 = arith.truncf %97 : vector<1x32xf32> to vector<1x32xbf16>
    %cst_44 = arith.constant dense<0.000000e+00> : vector<1x128xf32>
    %128 = tpu.matmul %127, %8, %cst_44 {dimension_numbers = #tpu.dot_dimension_numbers<[1], [0], [0], [1], [0, 0, 1, 1], [], []>} : vector<1x32xbf16>, vector<32x128xbf16>, vector<1x128xf32> -> vector<1x128xf32>
    %129 = arith.addf %126, %128 : vector<1x128xf32>
    %130 = math.tanh %129 : vector<1x128xf32>
    %131 = vector.extract_strided_slice %130 {offsets = [0, 0], sizes = [1, 32], strides = [1, 1]} : vector<1x128xf32> to vector<1x32xf32>
    %cst_45 = arith.constant 5.000000e-01 : f32
    %132 = vector.broadcast %cst_45 : f32 to vector<1x32xf32>
    %133 = arith.mulf %132, %131 : vector<1x32xf32>
    %cst_46 = arith.constant 5.000000e-01 : f32
    %134 = vector.broadcast %cst_46 : f32 to vector<1x32xf32>
    %135 = arith.addf %133, %134 : vector<1x32xf32>
    %136 = vector.extract_strided_slice %130 {offsets = [0, 32], sizes = [1, 32], strides = [1, 1]} : vector<1x128xf32> to vector<1x32xf32>
    %cst_47 = arith.constant 5.000000e-01 : f32
    %137 = vector.broadcast %cst_47 : f32 to vector<1x32xf32>
    %138 = arith.mulf %137, %136 : vector<1x32xf32>
    %cst_48 = arith.constant 5.000000e-01 : f32
    %139 = vector.broadcast %cst_48 : f32 to vector<1x32xf32>
    %140 = arith.addf %138, %139 : vector<1x32xf32>
    %141 = vector.extract_strided_slice %130 {offsets = [0, 64], sizes = [1, 32], strides = [1, 1]} : vector<1x128xf32> to vector<1x32xf32>
    %142 = vector.extract_strided_slice %130 {offsets = [0, 96], sizes = [1, 32], strides = [1, 1]} : vector<1x128xf32> to vector<1x32xf32>
    %cst_49 = arith.constant 5.000000e-01 : f32
    %143 = vector.broadcast %cst_49 : f32 to vector<1x32xf32>
    %144 = arith.mulf %143, %142 : vector<1x32xf32>
    %cst_50 = arith.constant 5.000000e-01 : f32
    %145 = vector.broadcast %cst_50 : f32 to vector<1x32xf32>
    %146 = arith.addf %144, %145 : vector<1x32xf32>
    %147 = arith.mulf %140, %95 : vector<1x32xf32>
    %148 = arith.mulf %135, %141 : vector<1x32xf32>
    %149 = arith.addf %147, %148 : vector<1x32xf32>
    %150 = math.tanh %149 : vector<1x32xf32>
    %151 = arith.mulf %146, %150 : vector<1x32xf32>
    %152 = arith.truncf %151 : vector<1x32xf32> to vector<1x32xbf16>
    %cst_51 = arith.constant dense<0.000000e+00> : vector<1x128xf32>
    %153 = tpu.matmul %152, %12, %cst_51 {dimension_numbers = #tpu.dot_dimension_numbers<[1], [0], [0], [1], [0, 0, 1, 1], [], []>} : vector<1x32xbf16>, vector<32x128xbf16>, vector<1x128xf32> -> vector<1x128xf32>
    %154 = arith.addf %13, %153 : vector<1x128xf32>
    %155 = arith.truncf %125 : vector<1x32xf32> to vector<1x32xbf16>
    %cst_52 = arith.constant dense<0.000000e+00> : vector<1x128xf32>
    %156 = tpu.matmul %155, %10, %cst_52 {dimension_numbers = #tpu.dot_dimension_numbers<[1], [0], [0], [1], [0, 0, 1, 1], [], []>} : vector<1x32xbf16>, vector<32x128xbf16>, vector<1x128xf32> -> vector<1x128xf32>
    %157 = arith.addf %154, %156 : vector<1x128xf32>
    %158 = math.tanh %157 : vector<1x128xf32>
    %159 = vector.extract_strided_slice %158 {offsets = [0, 0], sizes = [1, 32], strides = [1, 1]} : vector<1x128xf32> to vector<1x32xf32>
    %cst_53 = arith.constant 5.000000e-01 : f32
    %160 = vector.broadcast %cst_53 : f32 to vector<1x32xf32>
    %161 = arith.mulf %160, %159 : vector<1x32xf32>
    %cst_54 = arith.constant 5.000000e-01 : f32
    %162 = vector.broadcast %cst_54 : f32 to vector<1x32xf32>
    %163 = arith.addf %161, %162 : vector<1x32xf32>
    %164 = vector.extract_strided_slice %158 {offsets = [0, 32], sizes = [1, 32], strides = [1, 1]} : vector<1x128xf32> to vector<1x32xf32>
    %cst_55 = arith.constant 5.000000e-01 : f32
    %165 = vector.broadcast %cst_55 : f32 to vector<1x32xf32>
    %166 = arith.mulf %165, %164 : vector<1x32xf32>
    %cst_56 = arith.constant 5.000000e-01 : f32
    %167 = vector.broadcast %cst_56 : f32 to vector<1x32xf32>
    %168 = arith.addf %166, %167 : vector<1x32xf32>
    %169 = vector.extract_strided_slice %158 {offsets = [0, 64], sizes = [1, 32], strides = [1, 1]} : vector<1x128xf32> to vector<1x32xf32>
    %170 = vector.extract_strided_slice %158 {offsets = [0, 96], sizes = [1, 32], strides = [1, 1]} : vector<1x128xf32> to vector<1x32xf32>
    %cst_57 = arith.constant 5.000000e-01 : f32
    %171 = vector.broadcast %cst_57 : f32 to vector<1x32xf32>
    %172 = arith.mulf %171, %170 : vector<1x32xf32>
    %cst_58 = arith.constant 5.000000e-01 : f32
    %173 = vector.broadcast %cst_58 : f32 to vector<1x32xf32>
    %174 = arith.addf %172, %173 : vector<1x32xf32>
    %175 = arith.mulf %168, %123 : vector<1x32xf32>
    %176 = arith.mulf %163, %169 : vector<1x32xf32>
    %177 = arith.addf %175, %176 : vector<1x32xf32>
    %178 = math.tanh %177 : vector<1x32xf32>
    %179 = arith.mulf %174, %178 : vector<1x32xf32>
    %180 = vector.extract_strided_slice %6 {offsets = [3, 0], sizes = [1, 128], strides = [1, 1]} : vector<8x128xf32> to vector<1x128xf32>
    %181 = arith.truncf %151 : vector<1x32xf32> to vector<1x32xbf16>
    %cst_59 = arith.constant dense<0.000000e+00> : vector<1x128xf32>
    %182 = tpu.matmul %181, %8, %cst_59 {dimension_numbers = #tpu.dot_dimension_numbers<[1], [0], [0], [1], [0, 0, 1, 1], [], []>} : vector<1x32xbf16>, vector<32x128xbf16>, vector<1x128xf32> -> vector<1x128xf32>
    %183 = arith.addf %180, %182 : vector<1x128xf32>
    %184 = math.tanh %183 : vector<1x128xf32>
    %185 = vector.extract_strided_slice %184 {offsets = [0, 0], sizes = [1, 32], strides = [1, 1]} : vector<1x128xf32> to vector<1x32xf32>
    %cst_60 = arith.constant 5.000000e-01 : f32
    %186 = vector.broadcast %cst_60 : f32 to vector<1x32xf32>
    %187 = arith.mulf %186, %185 : vector<1x32xf32>
    %cst_61 = arith.constant 5.000000e-01 : f32
    %188 = vector.broadcast %cst_61 : f32 to vector<1x32xf32>
    %189 = arith.addf %187, %188 : vector<1x32xf32>
    %190 = vector.extract_strided_slice %184 {offsets = [0, 32], sizes = [1, 32], strides = [1, 1]} : vector<1x128xf32> to vector<1x32xf32>
    %cst_62 = arith.constant 5.000000e-01 : f32
    %191 = vector.broadcast %cst_62 : f32 to vector<1x32xf32>
    %192 = arith.mulf %191, %190 : vector<1x32xf32>
    %cst_63 = arith.constant 5.000000e-01 : f32
    %193 = vector.broadcast %cst_63 : f32 to vector<1x32xf32>
    %194 = arith.addf %192, %193 : vector<1x32xf32>
    %195 = vector.extract_strided_slice %184 {offsets = [0, 64], sizes = [1, 32], strides = [1, 1]} : vector<1x128xf32> to vector<1x32xf32>
    %196 = vector.extract_strided_slice %184 {offsets = [0, 96], sizes = [1, 32], strides = [1, 1]} : vector<1x128xf32> to vector<1x32xf32>
    %cst_64 = arith.constant 5.000000e-01 : f32
    %197 = vector.broadcast %cst_64 : f32 to vector<1x32xf32>
    %198 = arith.mulf %197, %196 : vector<1x32xf32>
    %cst_65 = arith.constant 5.000000e-01 : f32
    %199 = vector.broadcast %cst_65 : f32 to vector<1x32xf32>
    %200 = arith.addf %198, %199 : vector<1x32xf32>
    %201 = arith.mulf %194, %149 : vector<1x32xf32>
    %202 = arith.mulf %189, %195 : vector<1x32xf32>
    %203 = arith.addf %201, %202 : vector<1x32xf32>
    %204 = math.tanh %203 : vector<1x32xf32>
    %205 = arith.mulf %200, %204 : vector<1x32xf32>
    %206 = arith.truncf %205 : vector<1x32xf32> to vector<1x32xbf16>
    %cst_66 = arith.constant dense<0.000000e+00> : vector<1x128xf32>
    %207 = tpu.matmul %206, %12, %cst_66 {dimension_numbers = #tpu.dot_dimension_numbers<[1], [0], [0], [1], [0, 0, 1, 1], [], []>} : vector<1x32xbf16>, vector<32x128xbf16>, vector<1x128xf32> -> vector<1x128xf32>
    %208 = arith.addf %13, %207 : vector<1x128xf32>
    %209 = arith.truncf %179 : vector<1x32xf32> to vector<1x32xbf16>
    %cst_67 = arith.constant dense<0.000000e+00> : vector<1x128xf32>
    %210 = tpu.matmul %209, %10, %cst_67 {dimension_numbers = #tpu.dot_dimension_numbers<[1], [0], [0], [1], [0, 0, 1, 1], [], []>} : vector<1x32xbf16>, vector<32x128xbf16>, vector<1x128xf32> -> vector<1x128xf32>
    %211 = arith.addf %208, %210 : vector<1x128xf32>
    %212 = math.tanh %211 : vector<1x128xf32>
    %213 = vector.extract_strided_slice %212 {offsets = [0, 0], sizes = [1, 32], strides = [1, 1]} : vector<1x128xf32> to vector<1x32xf32>
    %cst_68 = arith.constant 5.000000e-01 : f32
    %214 = vector.broadcast %cst_68 : f32 to vector<1x32xf32>
    %215 = arith.mulf %214, %213 : vector<1x32xf32>
    %cst_69 = arith.constant 5.000000e-01 : f32
    %216 = vector.broadcast %cst_69 : f32 to vector<1x32xf32>
    %217 = arith.addf %215, %216 : vector<1x32xf32>
    %218 = vector.extract_strided_slice %212 {offsets = [0, 32], sizes = [1, 32], strides = [1, 1]} : vector<1x128xf32> to vector<1x32xf32>
    %cst_70 = arith.constant 5.000000e-01 : f32
    %219 = vector.broadcast %cst_70 : f32 to vector<1x32xf32>
    %220 = arith.mulf %219, %218 : vector<1x32xf32>
    %cst_71 = arith.constant 5.000000e-01 : f32
    %221 = vector.broadcast %cst_71 : f32 to vector<1x32xf32>
    %222 = arith.addf %220, %221 : vector<1x32xf32>
    %223 = vector.extract_strided_slice %212 {offsets = [0, 64], sizes = [1, 32], strides = [1, 1]} : vector<1x128xf32> to vector<1x32xf32>
    %224 = vector.extract_strided_slice %212 {offsets = [0, 96], sizes = [1, 32], strides = [1, 1]} : vector<1x128xf32> to vector<1x32xf32>
    %cst_72 = arith.constant 5.000000e-01 : f32
    %225 = vector.broadcast %cst_72 : f32 to vector<1x32xf32>
    %226 = arith.mulf %225, %224 : vector<1x32xf32>
    %cst_73 = arith.constant 5.000000e-01 : f32
    %227 = vector.broadcast %cst_73 : f32 to vector<1x32xf32>
    %228 = arith.addf %226, %227 : vector<1x32xf32>
    %229 = arith.mulf %222, %177 : vector<1x32xf32>
    %230 = arith.mulf %217, %223 : vector<1x32xf32>
    %231 = arith.addf %229, %230 : vector<1x32xf32>
    %232 = math.tanh %231 : vector<1x32xf32>
    %233 = arith.mulf %228, %232 : vector<1x32xf32>
    %234 = vector.extract_strided_slice %6 {offsets = [4, 0], sizes = [1, 128], strides = [1, 1]} : vector<8x128xf32> to vector<1x128xf32>
    %235 = arith.truncf %205 : vector<1x32xf32> to vector<1x32xbf16>
    %cst_74 = arith.constant dense<0.000000e+00> : vector<1x128xf32>
    %236 = tpu.matmul %235, %8, %cst_74 {dimension_numbers = #tpu.dot_dimension_numbers<[1], [0], [0], [1], [0, 0, 1, 1], [], []>} : vector<1x32xbf16>, vector<32x128xbf16>, vector<1x128xf32> -> vector<1x128xf32>
    %237 = arith.addf %234, %236 : vector<1x128xf32>
    %238 = math.tanh %237 : vector<1x128xf32>
    %239 = vector.extract_strided_slice %238 {offsets = [0, 0], sizes = [1, 32], strides = [1, 1]} : vector<1x128xf32> to vector<1x32xf32>
    %cst_75 = arith.constant 5.000000e-01 : f32
    %240 = vector.broadcast %cst_75 : f32 to vector<1x32xf32>
    %241 = arith.mulf %240, %239 : vector<1x32xf32>
    %cst_76 = arith.constant 5.000000e-01 : f32
    %242 = vector.broadcast %cst_76 : f32 to vector<1x32xf32>
    %243 = arith.addf %241, %242 : vector<1x32xf32>
    %244 = vector.extract_strided_slice %238 {offsets = [0, 32], sizes = [1, 32], strides = [1, 1]} : vector<1x128xf32> to vector<1x32xf32>
    %cst_77 = arith.constant 5.000000e-01 : f32
    %245 = vector.broadcast %cst_77 : f32 to vector<1x32xf32>
    %246 = arith.mulf %245, %244 : vector<1x32xf32>
    %cst_78 = arith.constant 5.000000e-01 : f32
    %247 = vector.broadcast %cst_78 : f32 to vector<1x32xf32>
    %248 = arith.addf %246, %247 : vector<1x32xf32>
    %249 = vector.extract_strided_slice %238 {offsets = [0, 64], sizes = [1, 32], strides = [1, 1]} : vector<1x128xf32> to vector<1x32xf32>
    %250 = vector.extract_strided_slice %238 {offsets = [0, 96], sizes = [1, 32], strides = [1, 1]} : vector<1x128xf32> to vector<1x32xf32>
    %cst_79 = arith.constant 5.000000e-01 : f32
    %251 = vector.broadcast %cst_79 : f32 to vector<1x32xf32>
    %252 = arith.mulf %251, %250 : vector<1x32xf32>
    %cst_80 = arith.constant 5.000000e-01 : f32
    %253 = vector.broadcast %cst_80 : f32 to vector<1x32xf32>
    %254 = arith.addf %252, %253 : vector<1x32xf32>
    %255 = arith.mulf %248, %203 : vector<1x32xf32>
    %256 = arith.mulf %243, %249 : vector<1x32xf32>
    %257 = arith.addf %255, %256 : vector<1x32xf32>
    %258 = math.tanh %257 : vector<1x32xf32>
    %259 = arith.mulf %254, %258 : vector<1x32xf32>
    %260 = arith.truncf %259 : vector<1x32xf32> to vector<1x32xbf16>
    %cst_81 = arith.constant dense<0.000000e+00> : vector<1x128xf32>
    %261 = tpu.matmul %260, %12, %cst_81 {dimension_numbers = #tpu.dot_dimension_numbers<[1], [0], [0], [1], [0, 0, 1, 1], [], []>} : vector<1x32xbf16>, vector<32x128xbf16>, vector<1x128xf32> -> vector<1x128xf32>
    %262 = arith.addf %13, %261 : vector<1x128xf32>
    %263 = arith.truncf %233 : vector<1x32xf32> to vector<1x32xbf16>
    %cst_82 = arith.constant dense<0.000000e+00> : vector<1x128xf32>
    %264 = tpu.matmul %263, %10, %cst_82 {dimension_numbers = #tpu.dot_dimension_numbers<[1], [0], [0], [1], [0, 0, 1, 1], [], []>} : vector<1x32xbf16>, vector<32x128xbf16>, vector<1x128xf32> -> vector<1x128xf32>
    %265 = arith.addf %262, %264 : vector<1x128xf32>
    %266 = math.tanh %265 : vector<1x128xf32>
    %267 = vector.extract_strided_slice %266 {offsets = [0, 0], sizes = [1, 32], strides = [1, 1]} : vector<1x128xf32> to vector<1x32xf32>
    %cst_83 = arith.constant 5.000000e-01 : f32
    %268 = vector.broadcast %cst_83 : f32 to vector<1x32xf32>
    %269 = arith.mulf %268, %267 : vector<1x32xf32>
    %cst_84 = arith.constant 5.000000e-01 : f32
    %270 = vector.broadcast %cst_84 : f32 to vector<1x32xf32>
    %271 = arith.addf %269, %270 : vector<1x32xf32>
    %272 = vector.extract_strided_slice %266 {offsets = [0, 32], sizes = [1, 32], strides = [1, 1]} : vector<1x128xf32> to vector<1x32xf32>
    %cst_85 = arith.constant 5.000000e-01 : f32
    %273 = vector.broadcast %cst_85 : f32 to vector<1x32xf32>
    %274 = arith.mulf %273, %272 : vector<1x32xf32>
    %cst_86 = arith.constant 5.000000e-01 : f32
    %275 = vector.broadcast %cst_86 : f32 to vector<1x32xf32>
    %276 = arith.addf %274, %275 : vector<1x32xf32>
    %277 = vector.extract_strided_slice %266 {offsets = [0, 64], sizes = [1, 32], strides = [1, 1]} : vector<1x128xf32> to vector<1x32xf32>
    %278 = vector.extract_strided_slice %266 {offsets = [0, 96], sizes = [1, 32], strides = [1, 1]} : vector<1x128xf32> to vector<1x32xf32>
    %cst_87 = arith.constant 5.000000e-01 : f32
    %279 = vector.broadcast %cst_87 : f32 to vector<1x32xf32>
    %280 = arith.mulf %279, %278 : vector<1x32xf32>
    %cst_88 = arith.constant 5.000000e-01 : f32
    %281 = vector.broadcast %cst_88 : f32 to vector<1x32xf32>
    %282 = arith.addf %280, %281 : vector<1x32xf32>
    %283 = arith.mulf %276, %231 : vector<1x32xf32>
    %284 = arith.mulf %271, %277 : vector<1x32xf32>
    %285 = arith.addf %283, %284 : vector<1x32xf32>
    %286 = math.tanh %285 : vector<1x32xf32>
    %287 = arith.mulf %282, %286 : vector<1x32xf32>
    %288 = vector.extract_strided_slice %6 {offsets = [5, 0], sizes = [1, 128], strides = [1, 1]} : vector<8x128xf32> to vector<1x128xf32>
    %289 = arith.truncf %259 : vector<1x32xf32> to vector<1x32xbf16>
    %cst_89 = arith.constant dense<0.000000e+00> : vector<1x128xf32>
    %290 = tpu.matmul %289, %8, %cst_89 {dimension_numbers = #tpu.dot_dimension_numbers<[1], [0], [0], [1], [0, 0, 1, 1], [], []>} : vector<1x32xbf16>, vector<32x128xbf16>, vector<1x128xf32> -> vector<1x128xf32>
    %291 = arith.addf %288, %290 : vector<1x128xf32>
    %292 = math.tanh %291 : vector<1x128xf32>
    %293 = vector.extract_strided_slice %292 {offsets = [0, 0], sizes = [1, 32], strides = [1, 1]} : vector<1x128xf32> to vector<1x32xf32>
    %cst_90 = arith.constant 5.000000e-01 : f32
    %294 = vector.broadcast %cst_90 : f32 to vector<1x32xf32>
    %295 = arith.mulf %294, %293 : vector<1x32xf32>
    %cst_91 = arith.constant 5.000000e-01 : f32
    %296 = vector.broadcast %cst_91 : f32 to vector<1x32xf32>
    %297 = arith.addf %295, %296 : vector<1x32xf32>
    %298 = vector.extract_strided_slice %292 {offsets = [0, 32], sizes = [1, 32], strides = [1, 1]} : vector<1x128xf32> to vector<1x32xf32>
    %cst_92 = arith.constant 5.000000e-01 : f32
    %299 = vector.broadcast %cst_92 : f32 to vector<1x32xf32>
    %300 = arith.mulf %299, %298 : vector<1x32xf32>
    %cst_93 = arith.constant 5.000000e-01 : f32
    %301 = vector.broadcast %cst_93 : f32 to vector<1x32xf32>
    %302 = arith.addf %300, %301 : vector<1x32xf32>
    %303 = vector.extract_strided_slice %292 {offsets = [0, 64], sizes = [1, 32], strides = [1, 1]} : vector<1x128xf32> to vector<1x32xf32>
    %304 = vector.extract_strided_slice %292 {offsets = [0, 96], sizes = [1, 32], strides = [1, 1]} : vector<1x128xf32> to vector<1x32xf32>
    %cst_94 = arith.constant 5.000000e-01 : f32
    %305 = vector.broadcast %cst_94 : f32 to vector<1x32xf32>
    %306 = arith.mulf %305, %304 : vector<1x32xf32>
    %cst_95 = arith.constant 5.000000e-01 : f32
    %307 = vector.broadcast %cst_95 : f32 to vector<1x32xf32>
    %308 = arith.addf %306, %307 : vector<1x32xf32>
    %309 = arith.mulf %302, %257 : vector<1x32xf32>
    %310 = arith.mulf %297, %303 : vector<1x32xf32>
    %311 = arith.addf %309, %310 : vector<1x32xf32>
    %312 = math.tanh %311 : vector<1x32xf32>
    %313 = arith.mulf %308, %312 : vector<1x32xf32>
    %314 = arith.truncf %313 : vector<1x32xf32> to vector<1x32xbf16>
    %cst_96 = arith.constant dense<0.000000e+00> : vector<1x128xf32>
    %315 = tpu.matmul %314, %12, %cst_96 {dimension_numbers = #tpu.dot_dimension_numbers<[1], [0], [0], [1], [0, 0, 1, 1], [], []>} : vector<1x32xbf16>, vector<32x128xbf16>, vector<1x128xf32> -> vector<1x128xf32>
    %316 = arith.addf %13, %315 : vector<1x128xf32>
    %317 = arith.truncf %287 : vector<1x32xf32> to vector<1x32xbf16>
    %cst_97 = arith.constant dense<0.000000e+00> : vector<1x128xf32>
    %318 = tpu.matmul %317, %10, %cst_97 {dimension_numbers = #tpu.dot_dimension_numbers<[1], [0], [0], [1], [0, 0, 1, 1], [], []>} : vector<1x32xbf16>, vector<32x128xbf16>, vector<1x128xf32> -> vector<1x128xf32>
    %319 = arith.addf %316, %318 : vector<1x128xf32>
    %320 = math.tanh %319 : vector<1x128xf32>
    %321 = vector.extract_strided_slice %320 {offsets = [0, 0], sizes = [1, 32], strides = [1, 1]} : vector<1x128xf32> to vector<1x32xf32>
    %cst_98 = arith.constant 5.000000e-01 : f32
    %322 = vector.broadcast %cst_98 : f32 to vector<1x32xf32>
    %323 = arith.mulf %322, %321 : vector<1x32xf32>
    %cst_99 = arith.constant 5.000000e-01 : f32
    %324 = vector.broadcast %cst_99 : f32 to vector<1x32xf32>
    %325 = arith.addf %323, %324 : vector<1x32xf32>
    %326 = vector.extract_strided_slice %320 {offsets = [0, 32], sizes = [1, 32], strides = [1, 1]} : vector<1x128xf32> to vector<1x32xf32>
    %cst_100 = arith.constant 5.000000e-01 : f32
    %327 = vector.broadcast %cst_100 : f32 to vector<1x32xf32>
    %328 = arith.mulf %327, %326 : vector<1x32xf32>
    %cst_101 = arith.constant 5.000000e-01 : f32
    %329 = vector.broadcast %cst_101 : f32 to vector<1x32xf32>
    %330 = arith.addf %328, %329 : vector<1x32xf32>
    %331 = vector.extract_strided_slice %320 {offsets = [0, 64], sizes = [1, 32], strides = [1, 1]} : vector<1x128xf32> to vector<1x32xf32>
    %332 = vector.extract_strided_slice %320 {offsets = [0, 96], sizes = [1, 32], strides = [1, 1]} : vector<1x128xf32> to vector<1x32xf32>
    %cst_102 = arith.constant 5.000000e-01 : f32
    %333 = vector.broadcast %cst_102 : f32 to vector<1x32xf32>
    %334 = arith.mulf %333, %332 : vector<1x32xf32>
    %cst_103 = arith.constant 5.000000e-01 : f32
    %335 = vector.broadcast %cst_103 : f32 to vector<1x32xf32>
    %336 = arith.addf %334, %335 : vector<1x32xf32>
    %337 = arith.mulf %330, %285 : vector<1x32xf32>
    %338 = arith.mulf %325, %331 : vector<1x32xf32>
    %339 = arith.addf %337, %338 : vector<1x32xf32>
    %340 = math.tanh %339 : vector<1x32xf32>
    %341 = arith.mulf %336, %340 : vector<1x32xf32>
    %342 = vector.extract_strided_slice %6 {offsets = [6, 0], sizes = [1, 128], strides = [1, 1]} : vector<8x128xf32> to vector<1x128xf32>
    %343 = arith.truncf %313 : vector<1x32xf32> to vector<1x32xbf16>
    %cst_104 = arith.constant dense<0.000000e+00> : vector<1x128xf32>
    %344 = tpu.matmul %343, %8, %cst_104 {dimension_numbers = #tpu.dot_dimension_numbers<[1], [0], [0], [1], [0, 0, 1, 1], [], []>} : vector<1x32xbf16>, vector<32x128xbf16>, vector<1x128xf32> -> vector<1x128xf32>
    %345 = arith.addf %342, %344 : vector<1x128xf32>
    %346 = math.tanh %345 : vector<1x128xf32>
    %347 = vector.extract_strided_slice %346 {offsets = [0, 0], sizes = [1, 32], strides = [1, 1]} : vector<1x128xf32> to vector<1x32xf32>
    %cst_105 = arith.constant 5.000000e-01 : f32
    %348 = vector.broadcast %cst_105 : f32 to vector<1x32xf32>
    %349 = arith.mulf %348, %347 : vector<1x32xf32>
    %cst_106 = arith.constant 5.000000e-01 : f32
    %350 = vector.broadcast %cst_106 : f32 to vector<1x32xf32>
    %351 = arith.addf %349, %350 : vector<1x32xf32>
    %352 = vector.extract_strided_slice %346 {offsets = [0, 32], sizes = [1, 32], strides = [1, 1]} : vector<1x128xf32> to vector<1x32xf32>
    %cst_107 = arith.constant 5.000000e-01 : f32
    %353 = vector.broadcast %cst_107 : f32 to vector<1x32xf32>
    %354 = arith.mulf %353, %352 : vector<1x32xf32>
    %cst_108 = arith.constant 5.000000e-01 : f32
    %355 = vector.broadcast %cst_108 : f32 to vector<1x32xf32>
    %356 = arith.addf %354, %355 : vector<1x32xf32>
    %357 = vector.extract_strided_slice %346 {offsets = [0, 64], sizes = [1, 32], strides = [1, 1]} : vector<1x128xf32> to vector<1x32xf32>
    %358 = vector.extract_strided_slice %346 {offsets = [0, 96], sizes = [1, 32], strides = [1, 1]} : vector<1x128xf32> to vector<1x32xf32>
    %cst_109 = arith.constant 5.000000e-01 : f32
    %359 = vector.broadcast %cst_109 : f32 to vector<1x32xf32>
    %360 = arith.mulf %359, %358 : vector<1x32xf32>
    %cst_110 = arith.constant 5.000000e-01 : f32
    %361 = vector.broadcast %cst_110 : f32 to vector<1x32xf32>
    %362 = arith.addf %360, %361 : vector<1x32xf32>
    %363 = arith.mulf %356, %311 : vector<1x32xf32>
    %364 = arith.mulf %351, %357 : vector<1x32xf32>
    %365 = arith.addf %363, %364 : vector<1x32xf32>
    %366 = math.tanh %365 : vector<1x32xf32>
    %367 = arith.mulf %362, %366 : vector<1x32xf32>
    %368 = arith.truncf %367 : vector<1x32xf32> to vector<1x32xbf16>
    %cst_111 = arith.constant dense<0.000000e+00> : vector<1x128xf32>
    %369 = tpu.matmul %368, %12, %cst_111 {dimension_numbers = #tpu.dot_dimension_numbers<[1], [0], [0], [1], [0, 0, 1, 1], [], []>} : vector<1x32xbf16>, vector<32x128xbf16>, vector<1x128xf32> -> vector<1x128xf32>
    %370 = arith.addf %13, %369 : vector<1x128xf32>
    %371 = arith.truncf %341 : vector<1x32xf32> to vector<1x32xbf16>
    %cst_112 = arith.constant dense<0.000000e+00> : vector<1x128xf32>
    %372 = tpu.matmul %371, %10, %cst_112 {dimension_numbers = #tpu.dot_dimension_numbers<[1], [0], [0], [1], [0, 0, 1, 1], [], []>} : vector<1x32xbf16>, vector<32x128xbf16>, vector<1x128xf32> -> vector<1x128xf32>
    %373 = arith.addf %370, %372 : vector<1x128xf32>
    %374 = math.tanh %373 : vector<1x128xf32>
    %375 = vector.extract_strided_slice %374 {offsets = [0, 0], sizes = [1, 32], strides = [1, 1]} : vector<1x128xf32> to vector<1x32xf32>
    %cst_113 = arith.constant 5.000000e-01 : f32
    %376 = vector.broadcast %cst_113 : f32 to vector<1x32xf32>
    %377 = arith.mulf %376, %375 : vector<1x32xf32>
    %cst_114 = arith.constant 5.000000e-01 : f32
    %378 = vector.broadcast %cst_114 : f32 to vector<1x32xf32>
    %379 = arith.addf %377, %378 : vector<1x32xf32>
    %380 = vector.extract_strided_slice %374 {offsets = [0, 32], sizes = [1, 32], strides = [1, 1]} : vector<1x128xf32> to vector<1x32xf32>
    %cst_115 = arith.constant 5.000000e-01 : f32
    %381 = vector.broadcast %cst_115 : f32 to vector<1x32xf32>
    %382 = arith.mulf %381, %380 : vector<1x32xf32>
    %cst_116 = arith.constant 5.000000e-01 : f32
    %383 = vector.broadcast %cst_116 : f32 to vector<1x32xf32>
    %384 = arith.addf %382, %383 : vector<1x32xf32>
    %385 = vector.extract_strided_slice %374 {offsets = [0, 64], sizes = [1, 32], strides = [1, 1]} : vector<1x128xf32> to vector<1x32xf32>
    %386 = vector.extract_strided_slice %374 {offsets = [0, 96], sizes = [1, 32], strides = [1, 1]} : vector<1x128xf32> to vector<1x32xf32>
    %cst_117 = arith.constant 5.000000e-01 : f32
    %387 = vector.broadcast %cst_117 : f32 to vector<1x32xf32>
    %388 = arith.mulf %387, %386 : vector<1x32xf32>
    %cst_118 = arith.constant 5.000000e-01 : f32
    %389 = vector.broadcast %cst_118 : f32 to vector<1x32xf32>
    %390 = arith.addf %388, %389 : vector<1x32xf32>
    %391 = arith.mulf %384, %339 : vector<1x32xf32>
    %392 = arith.mulf %379, %385 : vector<1x32xf32>
    %393 = arith.addf %391, %392 : vector<1x32xf32>
    %394 = math.tanh %393 : vector<1x32xf32>
    %395 = arith.mulf %390, %394 : vector<1x32xf32>
    %396 = vector.extract_strided_slice %6 {offsets = [7, 0], sizes = [1, 128], strides = [1, 1]} : vector<8x128xf32> to vector<1x128xf32>
    %397 = arith.truncf %367 : vector<1x32xf32> to vector<1x32xbf16>
    %cst_119 = arith.constant dense<0.000000e+00> : vector<1x128xf32>
    %398 = tpu.matmul %397, %8, %cst_119 {dimension_numbers = #tpu.dot_dimension_numbers<[1], [0], [0], [1], [0, 0, 1, 1], [], []>} : vector<1x32xbf16>, vector<32x128xbf16>, vector<1x128xf32> -> vector<1x128xf32>
    %399 = arith.addf %396, %398 : vector<1x128xf32>
    %400 = math.tanh %399 : vector<1x128xf32>
    %401 = vector.extract_strided_slice %400 {offsets = [0, 0], sizes = [1, 32], strides = [1, 1]} : vector<1x128xf32> to vector<1x32xf32>
    %cst_120 = arith.constant 5.000000e-01 : f32
    %402 = vector.broadcast %cst_120 : f32 to vector<1x32xf32>
    %403 = arith.mulf %402, %401 : vector<1x32xf32>
    %cst_121 = arith.constant 5.000000e-01 : f32
    %404 = vector.broadcast %cst_121 : f32 to vector<1x32xf32>
    %405 = arith.addf %403, %404 : vector<1x32xf32>
    %406 = vector.extract_strided_slice %400 {offsets = [0, 32], sizes = [1, 32], strides = [1, 1]} : vector<1x128xf32> to vector<1x32xf32>
    %cst_122 = arith.constant 5.000000e-01 : f32
    %407 = vector.broadcast %cst_122 : f32 to vector<1x32xf32>
    %408 = arith.mulf %407, %406 : vector<1x32xf32>
    %cst_123 = arith.constant 5.000000e-01 : f32
    %409 = vector.broadcast %cst_123 : f32 to vector<1x32xf32>
    %410 = arith.addf %408, %409 : vector<1x32xf32>
    %411 = vector.extract_strided_slice %400 {offsets = [0, 64], sizes = [1, 32], strides = [1, 1]} : vector<1x128xf32> to vector<1x32xf32>
    %412 = vector.extract_strided_slice %400 {offsets = [0, 96], sizes = [1, 32], strides = [1, 1]} : vector<1x128xf32> to vector<1x32xf32>
    %cst_124 = arith.constant 5.000000e-01 : f32
    %413 = vector.broadcast %cst_124 : f32 to vector<1x32xf32>
    %414 = arith.mulf %413, %412 : vector<1x32xf32>
    %cst_125 = arith.constant 5.000000e-01 : f32
    %415 = vector.broadcast %cst_125 : f32 to vector<1x32xf32>
    %416 = arith.addf %414, %415 : vector<1x32xf32>
    %417 = arith.mulf %410, %365 : vector<1x32xf32>
    %418 = arith.mulf %405, %411 : vector<1x32xf32>
    %419 = arith.addf %417, %418 : vector<1x32xf32>
    %420 = math.tanh %419 : vector<1x32xf32>
    %421 = arith.mulf %416, %420 : vector<1x32xf32>
    %422 = arith.truncf %421 : vector<1x32xf32> to vector<1x32xbf16>
    %cst_126 = arith.constant dense<0.000000e+00> : vector<1x128xf32>
    %423 = tpu.matmul %422, %12, %cst_126 {dimension_numbers = #tpu.dot_dimension_numbers<[1], [0], [0], [1], [0, 0, 1, 1], [], []>} : vector<1x32xbf16>, vector<32x128xbf16>, vector<1x128xf32> -> vector<1x128xf32>
    %424 = arith.addf %13, %423 : vector<1x128xf32>
    %425 = arith.truncf %395 : vector<1x32xf32> to vector<1x32xbf16>
    %cst_127 = arith.constant dense<0.000000e+00> : vector<1x128xf32>
    %426 = tpu.matmul %425, %10, %cst_127 {dimension_numbers = #tpu.dot_dimension_numbers<[1], [0], [0], [1], [0, 0, 1, 1], [], []>} : vector<1x32xbf16>, vector<32x128xbf16>, vector<1x128xf32> -> vector<1x128xf32>
    %427 = arith.addf %424, %426 : vector<1x128xf32>
    %428 = math.tanh %427 : vector<1x128xf32>
    %429 = vector.extract_strided_slice %428 {offsets = [0, 0], sizes = [1, 32], strides = [1, 1]} : vector<1x128xf32> to vector<1x32xf32>
    %cst_128 = arith.constant 5.000000e-01 : f32
    %430 = vector.broadcast %cst_128 : f32 to vector<1x32xf32>
    %431 = arith.mulf %430, %429 : vector<1x32xf32>
    %cst_129 = arith.constant 5.000000e-01 : f32
    %432 = vector.broadcast %cst_129 : f32 to vector<1x32xf32>
    %433 = arith.addf %431, %432 : vector<1x32xf32>
    %434 = vector.extract_strided_slice %428 {offsets = [0, 32], sizes = [1, 32], strides = [1, 1]} : vector<1x128xf32> to vector<1x32xf32>
    %cst_130 = arith.constant 5.000000e-01 : f32
    %435 = vector.broadcast %cst_130 : f32 to vector<1x32xf32>
    %436 = arith.mulf %435, %434 : vector<1x32xf32>
    %cst_131 = arith.constant 5.000000e-01 : f32
    %437 = vector.broadcast %cst_131 : f32 to vector<1x32xf32>
    %438 = arith.addf %436, %437 : vector<1x32xf32>
    %439 = vector.extract_strided_slice %428 {offsets = [0, 64], sizes = [1, 32], strides = [1, 1]} : vector<1x128xf32> to vector<1x32xf32>
    %440 = vector.extract_strided_slice %428 {offsets = [0, 96], sizes = [1, 32], strides = [1, 1]} : vector<1x128xf32> to vector<1x32xf32>
    %cst_132 = arith.constant 5.000000e-01 : f32
    %441 = vector.broadcast %cst_132 : f32 to vector<1x32xf32>
    %442 = arith.mulf %441, %440 : vector<1x32xf32>
    %cst_133 = arith.constant 5.000000e-01 : f32
    %443 = vector.broadcast %cst_133 : f32 to vector<1x32xf32>
    %444 = arith.addf %442, %443 : vector<1x32xf32>
    %445 = arith.mulf %438, %393 : vector<1x32xf32>
    %446 = arith.mulf %433, %439 : vector<1x32xf32>
    %447 = arith.addf %445, %446 : vector<1x32xf32>
    %448 = math.tanh %447 : vector<1x32xf32>
    %449 = arith.mulf %444, %448 : vector<1x32xf32>
    %450 = tpu.concatenate %71, %125, %179, %233, %287, %341, %395, %449 in 0 : vector<1x32xf32>, vector<1x32xf32>, vector<1x32xf32>, vector<1x32xf32>, vector<1x32xf32>, vector<1x32xf32>, vector<1x32xf32>, vector<1x32xf32> -> vector<8x32xf32>
    %c120 = arith.constant 120 : index
    %c0_134 = arith.constant 0 : index
    %451 = vector.load %arg2[%c120, %c0_134] : memref<736x128xf32, #tpu.memory_space<vmem>>, vector<32x128xf32>
    %cst_135 = arith.constant dense<0.000000e+00> : vector<8x128xf32>
    %452 = tpu.matmul %450, %451, %cst_135 {dimension_numbers = #tpu.dot_dimension_numbers<[1], [0], [0], [1], [0, 0, 1, 1], [], []>} : vector<8x32xf32>, vector<32x128xf32>, vector<8x128xf32> -> vector<8x128xf32>
    %c152 = arith.constant 152 : index
    %c0_136 = arith.constant 0 : index
    %453 = vector.load %arg2[%c152, %c0_136] : memref<736x128xf32, #tpu.memory_space<vmem>>, vector<16x128xf32>
    %cst_137 = arith.constant dense<0.000000e+00> : vector<8x128xf32>
    %454 = tpu.matmul %1, %453, %cst_137 {dimension_numbers = #tpu.dot_dimension_numbers<[1], [0], [0], [1], [0, 0, 1, 1], [], []>} : vector<8x16xf32>, vector<16x128xf32>, vector<8x128xf32> -> vector<8x128xf32>
    %455 = arith.addf %452, %454 : vector<8x128xf32>
    %c168 = arith.constant 168 : index
    %c0_138 = arith.constant 0 : index
    %456 = vector.load %arg2[%c168, %c0_138] : memref<736x128xf32, #tpu.memory_space<vmem>>, vector<1x128xf32>
    %457 = vector.broadcast %456 : vector<1x128xf32> to vector<8x128xf32>
    %458 = arith.addf %455, %457 : vector<8x128xf32>
    %cst_139 = arith.constant 0.000000e+00 : f32
    %459 = vector.broadcast %cst_139 : f32 to vector<8x128xf32>
    %460 = arith.maximumf %458, %459 : vector<8x128xf32>
    %c176 = arith.constant 176 : index
    %c0_140 = arith.constant 0 : index
    %461 = vector.load %arg2[%c176, %c0_140] : memref<736x128xf32, #tpu.memory_space<vmem>>, vector<128x128xf32>
    %cst_141 = arith.constant dense<0.000000e+00> : vector<8x128xf32>
    %462 = tpu.matmul %460, %461, %cst_141 {dimension_numbers = #tpu.dot_dimension_numbers<[1], [0], [0], [1], [0, 0, 1, 1], [], []>} : vector<8x128xf32>, vector<128x128xf32>, vector<8x128xf32> -> vector<8x128xf32>
    %c304 = arith.constant 304 : index
    %c0_142 = arith.constant 0 : index
    %463 = vector.load %arg2[%c304, %c0_142] : memref<736x128xf32, #tpu.memory_space<vmem>>, vector<1x128xf32>
    %464 = vector.broadcast %463 : vector<1x128xf32> to vector<8x128xf32>
    %465 = arith.addf %462, %464 : vector<8x128xf32>
    %cst_143 = arith.constant 0.000000e+00 : f32
    %466 = vector.broadcast %cst_143 : f32 to vector<8x128xf32>
    %467 = arith.maximumf %465, %466 : vector<8x128xf32>
    %c312 = arith.constant 312 : index
    %c0_144 = arith.constant 0 : index
    %468 = vector.load %arg2[%c312, %c0_144] : memref<736x128xf32, #tpu.memory_space<vmem>>, vector<128x128xf32>
    %cst_145 = arith.constant dense<0.000000e+00> : vector<8x128xf32>
    %469 = tpu.matmul %467, %468, %cst_145 {dimension_numbers = #tpu.dot_dimension_numbers<[1], [0], [0], [1], [0, 0, 1, 1], [], []>} : vector<8x128xf32>, vector<128x128xf32>, vector<8x128xf32> -> vector<8x128xf32>
    %c440 = arith.constant 440 : index
    %c0_146 = arith.constant 0 : index
    %470 = vector.load %arg2[%c440, %c0_146] : memref<736x128xf32, #tpu.memory_space<vmem>>, vector<1x128xf32>
    %471 = vector.broadcast %470 : vector<1x128xf32> to vector<8x128xf32>
    %472 = arith.addf %469, %471 : vector<8x128xf32>
    %cst_147 = arith.constant 0.000000e+00 : f32
    %473 = vector.broadcast %cst_147 : f32 to vector<8x128xf32>
    %474 = arith.maximumf %472, %473 : vector<8x128xf32>
    %c448 = arith.constant 448 : index
    %c0_148 = arith.constant 0 : index
    %475 = vector.load %arg2[%c448, %c0_148] : memref<736x128xf32, #tpu.memory_space<vmem>>, vector<128x128xf32>
    %cst_149 = arith.constant dense<0.000000e+00> : vector<8x128xf32>
    %476 = tpu.matmul %474, %475, %cst_149 {dimension_numbers = #tpu.dot_dimension_numbers<[1], [0], [0], [1], [0, 0, 1, 1], [], []>} : vector<8x128xf32>, vector<128x128xf32>, vector<8x128xf32> -> vector<8x128xf32>
    %c576 = arith.constant 576 : index
    %c0_150 = arith.constant 0 : index
    %477 = vector.load %arg2[%c576, %c0_150] : memref<736x128xf32, #tpu.memory_space<vmem>>, vector<16x128xf32>
    %cst_151 = arith.constant dense<0.000000e+00> : vector<8x128xf32>
    %478 = tpu.matmul %1, %477, %cst_151 {dimension_numbers = #tpu.dot_dimension_numbers<[1], [0], [0], [1], [0, 0, 1, 1], [], []>} : vector<8x16xf32>, vector<16x128xf32>, vector<8x128xf32> -> vector<8x128xf32>
    %479 = arith.addf %476, %478 : vector<8x128xf32>
    %c592 = arith.constant 592 : index
    %c0_152 = arith.constant 0 : index
    %480 = vector.load %arg2[%c592, %c0_152] : memref<736x128xf32, #tpu.memory_space<vmem>>, vector<1x128xf32>
    %481 = vector.broadcast %480 : vector<1x128xf32> to vector<8x128xf32>
    %482 = arith.addf %479, %481 : vector<8x128xf32>
    %cst_153 = arith.constant 0.000000e+00 : f32
    %483 = vector.broadcast %cst_153 : f32 to vector<8x128xf32>
    %484 = arith.maximumf %482, %483 : vector<8x128xf32>
    %c600 = arith.constant 600 : index
    %c0_154 = arith.constant 0 : index
    %485 = vector.load %arg2[%c600, %c0_154] : memref<736x128xf32, #tpu.memory_space<vmem>>, vector<128x128xf32>
    %cst_155 = arith.constant dense<0.000000e+00> : vector<8x128xf32>
    %486 = tpu.matmul %484, %485, %cst_155 {dimension_numbers = #tpu.dot_dimension_numbers<[1], [0], [0], [1], [0, 0, 1, 1], [], []>} : vector<8x128xf32>, vector<128x128xf32>, vector<8x128xf32> -> vector<8x128xf32>
    %c728 = arith.constant 728 : index
    %c0_156 = arith.constant 0 : index
    %487 = vector.load %arg2[%c728, %c0_156] : memref<736x128xf32, #tpu.memory_space<vmem>>, vector<1x128xf32>
    %488 = vector.broadcast %487 : vector<1x128xf32> to vector<8x128xf32>
    %489 = arith.addf %486, %488 : vector<8x128xf32>
    %c0_157 = arith.constant 0 : index
    %c0_158 = arith.constant 0 : index
    %490 = vector.load %arg3[%c0_157, %c0_158] : memref<8x128xf32, #tpu.memory_space<vmem>>, vector<8x128xf32>
    tpu.vector_store %arg3[%c0_157, %c0_158], %489 {strides = array<i32>} : memref<8x128xf32, #tpu.memory_space<vmem>>, vector<8x128xf32>,
    return
  }
}

</mosaic_0001>

<bundles_post_ra>
// kernel: forward.1
= control target key start
LH: loop header
LB: loop body
LE: loop exit
PB: predicated region body
PF: predicated region fallthrough
CT: control target
= control target key end

     0   :  { %8 = vsyncpa [#allocation3], 0  ;;  %s3034_s12 = smov [#allocation2]   ;;  %s3485_s0 = inlined_call_operand.vmem [shape: f32[8,8], index: 0, kind: input, shape index: {}]   ;;  %s3486_s1 = inlined_call_operand.vmem [shape: f32[8,16], index: 1, kind: input, shape index: {}]   ;;  %s3487_s2 = inlined_call_operand.hbm [shape: f32[736,128], index: 2, kind: input, shape index: {}]   ;;  %s3488_s3 = inlined_call_operand.vmem [shape: f32[8,128], index: 3, kind: output, shape index: {}]  }
   0x1   :  { %s18_s13 = sshll.u32 %s3034_s12, 4  ;;  %s3010_s16 = scalar_lea.hbm %s3487_s2, 11776  ;;  %s19_s13 = int_to_ptr.vmem [resolvable:$true] %s18_s13 }
   0x2   :  { %p3011_p0 = scmp.ne.s32.totalorder %s3487_s2, %s3010_s16  ;;  %p3014_p1 = scmp.lt.u32.totalorder %s3010_s16, %s3487_s2 }
   0x4   :  { %p3016_p2 = pnand %p3014_p1, %p3011_p0 }
   0x6   :  { %3019 = shalt.err (!%p3016_p2)
}
   0x7   :  { %s3020_s21 = scalar_lea.vmem %s19_s13, 11776  ;;  %p3025_p4 = scmp.lt.s32.totalorder %s19_s13, %s19_s13 }
   0x8   :  { %p3021_p3 = scmp.ne.s32.totalorder %s19_s13, %s3020_s21  ;;  %p3026_p5 = scmp.lt.s32.totalorder %s3020_s21, %s3020_s21 }
   0xa   :  { %p3027_p6 = por %p3026_p5, %p3025_p4 }
   0xc   :  { %p3028_p7 = pnand %p3027_p6, %p3021_p3 }
   0xe   :  { %3031 = shalt.err (!%p3028_p7)
}
   0xf   :  { %s3035_s22 = smov 128   ;;  %s3036_s23 = smov 8  }
  0x10   :  { %24 = dma.hbm_to_vmem [thread:$0]  %s3487_s2, 11776, %s19_s13, [#allocation3], %s3035_s22, %s3035_s22, %s3036_s23  }
  0x11   :  { %3032 = dma.done.wait [#allocation3], 11776  }
  0x12   :  { %3033 = vsyncadd [#allocation3], 4294955520  ;;  %v3037_v0 = vmov 0.0   ;;  %vm3038_vm0 = vmmov 0   ;;  %vm37_vm1 = vcmask 64512   ;;  %v111_v1 = vld [vmem:[#allocation2 + $0x8] sm:$0xff] }
  0x13   :  { %2432 = vmatprep.subr.bf16.mxu1 %v3037_v0  ;;  %2427 = vmatprep.subr.mxu0 %v3037_v0  ;;  %v112_v2 = vld [vmem:[#allocation2 + $0x10] sm:$0xff]  ;;  %v31_v3 = vld [vmem:[#allocation2] sm:$0xff]  ;;  %v113_v6 = vld [vmem:[#allocation2 + $0x18] sm:$0xff]  ;;  %v3039_v9 = vmov 0   ;;  %s3041_s27 = smov 32   ;;  %vm130_vm2 = vcmask 261120  }
  0x14   :  { %2429 = vmatprep.mubr.msk.f32.mxu0 %vm3038_vm0, %v3037_v0  ;;  %2436 = vmatprep.mubr.msk.bf16.mxu1 %vm3038_vm0, %v3037_v0  ;;  %v3081_v4 = vpack.c.bf16 %v112_v2, %v111_v1  ;;  %v29_v5 = vld [vmem:[%s3485_s0] sm:$0xff]  ;;  %v2242_v12 = vld [vmem:[#allocation2 + $0x28] ss:$0 sm:$0xff]  ;;  %s3040_s0 = smov 64   ;;  %v123_v27 = vld [vmem:[#allocation2 + $0x30] sm:$0xff]  ;;  %vm1620_vm3 = vcmask 1040384  }
  0x15   :  { %2428 = vmatpush3.msra.mxu0 %v31_v3  ;;  %v114_v7 = vld [vmem:[#allocation2 + $0x20] sm:$0xff]  ;;  %v124_v28 = vld [vmem:[#allocation2 + $0x38] sm:$0xff]  ;;  %v126_v31 = vld [vmem:[#allocation2 + $0x48] sm:$0xff]  ;;  %vm1622_vm4 = vcmask 1041408   ;;  %vm1624_vm5 = vcmask 1042432   ;;  %vm1626_vm6 = vcmask 1043456  }
  0x16   :  { %2430 = vmatmul.mubr.msk.f32.vlgmr.msra.gmra.mrb[0].mxu0 %vm37_vm1, %v29_v5  ;;  %2440 = vmatprep.subr.bf16.mxu0 %v3037_v0  ;;  %v3088_v8 = vpack.c.bf16 %v114_v7, %v113_v6  ;;  %v125_v29 = vld [vmem:[#allocation2 + $0x40] sm:$0xff]  ;;  %v3110_v30 = vpack.c.bf16 %v124_v28, %v123_v27  ;;  %v117_v37 = vld [vmem:[#allocation2 + $0x50] sm:$0xff]  ;;  %v118_v38 = vld [vmem:[#allocation2 + $0x58] sm:$0xff]  ;;  %vm1628_vm7 = vcmask 1044480   ;;  %vm1630_vm8 = vcmask 1045504  }
  0x17   :  { %2433 = vmatpush3.bf16.msra.mxu1 %v3081_v4  ;;  %2444 = vmatprep.mubr.msk.bf16.mxu0 %vm3038_vm0, %v3037_v0  ;;  %v3113_v32 = vpack.c.bf16 %v126_v31, %v125_v29  ;;  %v3120_v39 = vpack.c.bf16 %v118_v38, %v117_v37  ;;  %v119_v40 = vld [vmem:[#allocation2 + $0x60] sm:$0xff]  ;;  %v120_v41 = vld [vmem:[#allocation2 + $0x68] sm:$0xff]  ;;  %v3146_v50 = vld [vmem:[#allocation2 + $0x70] sm:$0x1]  ;;  %vm1640_vm9 = vcmask 130048   ;;  %vm1632_vm10 = vcmask 1046528  }
  0x18   :  { %2434 = vmatprep.subr.bf16.mxu1 %v3037_v0  ;;  %2441 = vmatpush3.bf16.msra.mxu0 %v3110_v30  ;;  %v3125_v43 = vpack.c.bf16 %v120_v41, %v119_v40 }
  0x19   :  { %2442 = vmatprep.subr.bf16.mxu0 %v3037_v0 }
  0x1b   :  { %2435 = vmatpush3.bf16.msra.mxu1 %v3088_v8 }
  0x1c   :  { %2456 = vmatprep.subr.bf16.mxu1 %v3037_v0  ;;  %2443 = vmatpush3.bf16.msra.mxu0 %v3113_v32 }
  0x1d   :  { %2448 = vmatprep.subr.bf16.mxu0 %v3037_v0 }
  0x1e   :  { %2437 = vmatmul.mubr.bf16.vlgmr.msra.gmra.mrb[0].mxu1 %v3039_v9 }
  0x1f   :  { %2457 = vmatpush3.bf16.msra.mxu1 %v3081_v4  ;;  %2460 = vmatprep.mubr.msk.bf16.mxu1 %vm3038_vm0, %v3037_v0 }
  0x20   :  { %2458 = vmatprep.subr.bf16.mxu1 %v3037_v0 }
  0x23   :  { %2459 = vmatpush3.bf16.msra.mxu1 %v3088_v8 }
  0x24   :  { %2464 = vmatprep.subr.bf16.mxu1 %v3037_v0 }
  0xe9   :  { %v107_v10 = vpop.f32.mrb[0].mxu0 }
  0xea   :  { %v2431_v11 = vpop.f32.mrb[1].mxu0  ;;  %v3102_v13 = vadd.f32 %v2242_v12, %v107_v10 }
  0xf1   :  { %v168_v14 = vpop.f32.mrb[0].mxu1 }
  0xf2   :  { %v174_v15 = vadd.f32 %v168_v14, %v3102_v13  ;;  %v2438_v16 = vpop.f32.mrb[1].mxu1 }
  0xf3   :  { %v171_v17 = vpop.f32.mrb[2].mxu1 }
  0xf4   :  { %2946 = vtanh.f32 %v174_v15  ;;  %v2439_v18 = vpop.f32.mrb[3].mxu1 }
  0xfe   :  { %v2947_v19 = vpop.eup %2946 }
  0xff   :  { %180 = vrot.lane.b32.xlu0 %v2947_v19, %s3040_s0  ;;  %v176_v20 = vmul.f32 0.5, %v2947_v19 }
 0x101   :  { %v177_v21 = vadd.f32 0.5, %v176_v20 }
 0x103   :  { %v178_v24 = vmul.f32 0.0, %v177_v21 }
 0x171   :  { %v181_v22 = vpop.permute.xlu0 %180 }
 0x172   :  { %v183_v23 = vmul.f32 %v181_v22, %v177_v21 }
 0x174   :  { %185 = vrot.lane.b32.xlu0 %v183_v23, %s3041_s27 }
 0x1e6   :  { %v186_v25 = vpop.permute.xlu0 %185 }
 0x1e7   :  { %v3107_v26 = vadd.f32 %v186_v25, %v178_v24 }
 0x1e9   :  { %2948 = vtanh.f32 %v3107_v26  ;;  %v352_v3 = vrot.slane %v3107_v26, 7 }
 0x1f3   :  { %v2949_v33 = vpop.eup %2948 }
 0x1f4   :  { %191 = vrot.lane.b32.xlu1 %v2949_v33, %s3040_s0 }
 0x266   :  { %v192_v34 = vpop.permute.xlu1 %191 }
 0x267   :  { %v194_v35 = vmul.f32 %v192_v34, %v177_v21 }
 0x269   :  { %v195_v36 = vpack.c.bf16 %v194_v35, %v194_v35 }
 0x26b   :  { %197 = vrot.lane.b32.xlu1 %v195_v36, %s3041_s27 }
 0x2dd   :  { %v198_v42 = vpop.permute.xlu1 %197 }
 0x2de   :  { %2445 = vmatmul.mubr.msk.bf16.vlgmr.msra.gmra.mrb[4].mxu0 %vm130_vm2, %v198_v42  ;;  %2461 = vmatmul.mubr.msk.bf16.vlgmr.msra.gmra.mrb[4].mxu1 %vm130_vm2, %v198_v42 }
 0x2df   :  { %2449 = vmatpush3.bf16.msra.mxu0 %v3120_v39  ;;  %2452 = vmatprep.mubr.msk.bf16.mxu0 %vm3038_vm0, %v3037_v0 }
 0x2e0   :  { %2450 = vmatprep.subr.bf16.mxu0 %v3037_v0  ;;  %2465 = vmatpush3.bf16.msra.mxu1 %v3110_v30 }
 0x2e1   :  { %2466 = vmatprep.subr.bf16.mxu1 %v3037_v0  ;;  %2468 = vmatprep.mubr.msk.bf16.mxu1 %vm3038_vm0, %v3037_v0 }
 0x2e3   :  { %2451 = vmatpush3.bf16.msra.mxu0 %v3125_v43 }
 0x2e4   :  { %2480 = vmatprep.subr.bf16.mxu0 %v3037_v0  ;;  %2467 = vmatpush3.bf16.msra.mxu1 %v3113_v32 }
 0x2e5   :  { %2472 = vmatprep.subr.bf16.mxu1 %v3037_v0 }
 0x2ea   :  { %2453 = vmatmul.mubr.bf16.vlgmr.msra.gmra.mrb[4].mxu0 %v3039_v9 }
 0x2eb   :  { %2481 = vmatpush3.bf16.msra.mxu0 %v3081_v4  ;;  %2484 = vmatprep.mubr.msk.bf16.mxu0 %vm3038_vm0, %v3037_v0 }
 0x2ec   :  { %2482 = vmatprep.subr.bf16.mxu0 %v3037_v0 }
 0x2ef   :  { %2483 = vmatpush3.bf16.msra.mxu0 %v3088_v8 }
 0x2f0   :  { %2488 = vmatprep.subr.bf16.mxu0 %v3037_v0 }
 0x3b1   :  { %v338_v44 = vpop.f32.mrb[4].mxu1 }
 0x3b2   :  { %v345_v45 = vrot.slane %v338_v44, 7  ;;  %v2462_v46 = vpop.f32.mrb[5].mxu1 }
 0x3b3   :  { %v341_v47 = vpop.f32.mrb[6].mxu1 }
 0x3b4   :  { %v347_v48 = vadd.f32 %v345_v45, %v3102_v13  ;;  %v2463_v49 = vpop.f32.mrb[7].mxu1 }
 0x3b6   :  { %2950 = vtanh.f32 %v347_v48 }
 0x3bd   :  { %v277_v51 = vpop.f32.mrb[4].mxu0 }
 0x3be   :  { %v2897_v52 = vadd.f32 %v277_v51, %v3146_v50  ;;  %v2454_v53 = vpop.f32.mrb[5].mxu0 }
 0x3bf   :  { %v280_v54 = vpop.f32.mrb[6].mxu0 }
 0x3c0   :  { %v2951_v55 = vpop.eup %2950  ;;  %2952 = vtanh.f32 %v2897_v52  ;;  %v2455_v56 = vpop.f32.mrb[7].mxu0 }
 0x3c1   :  { %356 = vrot.lane.b32.xlu0 %v2951_v55, %s3040_s0  ;;  %v349_v58 = vmul.f32 0.5, %v2951_v55 }
 0x3c3   :  { %v350_v59 = vadd.f32 0.5, %v349_v58 }
 0x3c5   :  { %v354_v5 = vmul.f32 %v352_v3, %v350_v59 }
 0x3ca   :  { %v2953_v57 = vpop.eup %2952 }
 0x3cb   :  { %289 = vrot.lane.b32.xlu1 %v2953_v57, %s3040_s0  ;;  %v285_v62 = vmul.f32 0.5, %v2953_v57 }
 0x3cd   :  { %v286_v63 = vadd.f32 0.5, %v285_v62 }
 0x3cf   :  { %v287_v9 = vmul.f32 0.0, %v286_v63 }
 0x433   :  { %v357_v60 = vpop.permute.xlu0 %356 }
 0x434   :  { %v359_v61 = vmul.f32 %v357_v60, %v350_v59 }
 0x436   :  { %361 = vrot.lane.b32.xlu0 %v359_v61, %s3041_s27 }
 0x43d   :  { %v290_v1 = vpop.permute.xlu1 %289 }
 0x43e   :  { %v292_v2 = vmul.f32 %v290_v1, %v286_v63 }
 0x440   :  { %294 = vrot.lane.b32.xlu1 %v292_v2, %s3041_s27 }
 0x4a8   :  { %v362_v6 = vpop.permute.xlu0 %361 }
 0x4a9   :  { %v3154_v7 = vadd.f32 %v362_v6, %v354_v5 }
 0x4ab   :  { %2954 = vtanh.f32 %v3154_v7  ;;  %v537_v49 = vrot.slane %v3154_v7, 7 }
 0x4b2   :  { %v295_v10 = vpop.permute.xlu1 %294 }
 0x4b3   :  { %v3157_v11 = vadd.f32 %v295_v10, %v287_v9 }
 0x4b5   :  { %v2955_v12 = vpop.eup %2954  ;;  %2956 = vtanh.f32 %v3157_v11 }
 0x4b6   :  { %367 = vrot.lane.b32.xlu0 %v2955_v12, %s3040_s0 }
 0x4bf   :  { %v2957_v14 = vpop.eup %2956 }
 0x4c0   :  { %300 = vrot.lane.b32.xlu1 %v2957_v14, %s3040_s0 }
 0x528   :  { %v368_v15 = vpop.permute.xlu0 %367 }
 0x529   :  { %v370_v16 = vmul.f32 %v368_v15, %v350_v59 }
 0x52b   :  { %v371_v17 = vpack.c.bf16 %v370_v16, %v370_v16 }
 0x52d   :  { %v373_v18 = vshrl.u32 %v371_v17, 16 }
 0x52f   :  { %375 = vrot.lane.b32.xlu0 %v373_v18, %s3041_s27 }
 0x532   :  { %v301_v19 = vpop.permute.xlu1 %300 }
 0x533   :  { %v3163_v20 = vmul.f32 %v301_v19, %v286_v63 }
 0x535   :  { %v421_v21 = vpack.c.bf16 %v3163_v20, %v3163_v20 }
 0x537   :  { %423 = vrot.lane.b32.xlu1 %v421_v21, %s3041_s27 }
 0x5a1   :  { %v376_v22 = vpop.permute.xlu0 %375 }
 0x5a2   :  { %2469 = vmatmul.mubr.msk.bf16.vlgmr.msra.gmra.mrb[8].mxu1 %vm130_vm2, %v376_v22  ;;  %2485 = vmatmul.mubr.msk.bf16.vlgmr.msra.gmra.mrb[8].mxu0 %vm130_vm2, %v376_v22 }
 0x5a3   :  { %2473 = vmatpush3.bf16.msra.mxu1 %v3120_v39  ;;  %2476 = vmatprep.mubr.msk.bf16.mxu1 %vm3038_vm0, %v3037_v0 }
 0x5a4   :  { %2474 = vmatprep.subr.bf16.mxu1 %v3037_v0  ;;  %2489 = vmatpush3.bf16.msra.mxu0 %v3110_v30 }
 0x5a5   :  { %2490 = vmatprep.subr.bf16.mxu0 %v3037_v0  ;;  %2492 = vmatprep.mubr.msk.bf16.mxu0 %vm3038_vm0, %v3037_v0 }
 0x5a7   :  { %2475 = vmatpush3.bf16.msra.mxu1 %v3125_v43 }
 0x5a8   :  { %2504 = vmatprep.subr.bf16.mxu1 %v3037_v0  ;;  %2491 = vmatpush3.bf16.msra.mxu0 %v3113_v32 }
 0x5a9   :  { %2496 = vmatprep.subr.bf16.mxu0 %v3037_v0  ;;  %v424_v23 = vpop.permute.xlu1 %423 }
 0x5ae   :  { %2477 = vmatmul.mubr.msk.bf16.vlgmr.msra.gmra.mrb[8].mxu1 %vm130_vm2, %v424_v23 }
 0x5af   :  { %2505 = vmatpush3.bf16.msra.mxu1 %v3081_v4  ;;  %2508 = vmatprep.mubr.msk.bf16.mxu1 %vm3038_vm0, %v3037_v0 }
 0x5b0   :  { %2506 = vmatprep.subr.bf16.mxu1 %v3037_v0 }
 0x5b3   :  { %2507 = vmatpush3.bf16.msra.mxu1 %v3088_v8 }
 0x5b4   :  { %2512 = vmatprep.subr.bf16.mxu1 %v3037_v0 }
 0x675   :  { %v523_v24 = vpop.f32.mrb[8].mxu0 }
 0x676   :  { %v530_v25 = vrot.slane %v523_v24, 6  ;;  %v2486_v26 = vpop.f32.mrb[9].mxu0 }
 0x677   :  { %v526_v27 = vpop.f32.mrb[10].mxu0 }
 0x678   :  { %v532_v28 = vadd.f32 %v530_v25, %v3102_v13  ;;  %v2487_v29 = vpop.f32.mrb[11].mxu0 }
 0x67a   :  { %2958 = vtanh.f32 %v532_v28 }
 0x681   :  { %v462_v31 = vpop.f32.mrb[8].mxu1 }
 0x682   :  { %v2898_v33 = vadd.f32 %v462_v31, %v3146_v50  ;;  %v2478_v34 = vpop.f32.mrb[9].mxu1 }
 0x683   :  { %v465_v35 = vpop.f32.mrb[10].mxu1 }
 0x684   :  { %v2959_v36 = vpop.eup %2958  ;;  %2960 = vtanh.f32 %v2898_v33  ;;  %v2479_v37 = vpop.f32.mrb[11].mxu1 }
 0x685   :  { %541 = vrot.lane.b32.xlu0 %v2959_v36, %s3040_s0  ;;  %v534_v40 = vmul.f32 0.5, %v2959_v36 }
 0x687   :  { %v535_v41 = vadd.f32 0.5, %v534_v40 }
 0x689   :  { %v539_v51 = vmul.f32 %v537_v49, %v535_v41 }
 0x68e   :  { %v2961_v38 = vpop.eup %2960 }
 0x68f   :  { %474 = vrot.lane.b32.xlu1 %v2961_v38, %s3040_s0  ;;  %v470_v45 = vmul.f32 0.5, %v2961_v38 }
 0x691   :  { %v471_v46 = vadd.f32 0.5, %v470_v45 }
 0x693   :  { %v472_v54 = vmul.f32 %v471_v46, %v3157_v11 }
 0x6f7   :  { %v542_v42 = vpop.permute.xlu0 %541 }
 0x6f8   :  { %v544_v44 = vmul.f32 %v542_v42, %v535_v41 }
 0x6fa   :  { %546 = vrot.lane.b32.xlu0 %v544_v44, %s3041_s27 }
 0x701   :  { %v475_v47 = vpop.permute.xlu1 %474 }
 0x702   :  { %v477_v48 = vmul.f32 %v475_v47, %v471_v46 }
 0x704   :  { %479 = vrot.lane.b32.xlu1 %v477_v48, %s3041_s27 }
 0x76c   :  { %v547_v52 = vpop.permute.xlu0 %546 }
 0x76d   :  { %v3196_v53 = vadd.f32 %v547_v52, %v539_v51 }
 0x76f   :  { %2962 = vtanh.f32 %v3196_v53  ;;  %v721_v31 = vrot.slane %v3196_v53, 7 }
 0x776   :  { %v480_v55 = vpop.permute.xlu1 %479 }
 0x777   :  { %v3200_v56 = vadd.f32 %v480_v55, %v472_v54 }
 0x779   :  { %v2963_v57 = vpop.eup %2962  ;;  %2964 = vtanh.f32 %v3200_v56 }
 0x77a   :  { %552 = vrot.lane.b32.xlu0 %v2963_v57, %s3040_s0 }
 0x783   :  { %v2965_v58 = vpop.eup %2964 }
 0x784   :  { %485 = vrot.lane.b32.xlu1 %v2965_v58, %s3040_s0 }
 0x7ec   :  { %v553_v59 = vpop.permute.xlu0 %552 }
 0x7ed   :  { %v555_v60 = vmul.f32 %v553_v59, %v535_v41 }
 0x7ef   :  { %v556_v61 = vpack.c.bf16 %v555_v60, %v555_v60 }
 0x7f1   :  { %v558_v62 = vrot.slane %v556_v61, 1 }
 0x7f3   :  { %559 = vrot.lane.b32.xlu0 %v558_v62, %s3041_s27 }
 0x7f6   :  { %v486_v63 = vpop.permute.xlu1 %485 }
 0x7f7   :  { %v3206_v1 = vmul.f32 %v486_v63, %v471_v46 }
 0x7f9   :  { %v605_v2 = vpack.c.bf16 %v3206_v1, %v3206_v1  ;;  %v1600_v48 = vrot.slane %v3206_v1, 7 }
 0x7fb   :  { %607 = vrot.lane.b32.xlu1 %v605_v2, %s3041_s27  ;;  %v1621_v54 = vsel %vm1620_vm3, %v3163_v20, %v1600_v48 }
 0x865   :  { %v560_v3 = vpop.permute.xlu0 %559 }
 0x866   :  { %2493 = vmatmul.mubr.msk.bf16.vlgmr.msra.gmra.mrb[12].mxu0 %vm130_vm2, %v560_v3  ;;  %2509 = vmatmul.mubr.msk.bf16.vlgmr.msra.gmra.mrb[12].mxu1 %vm130_vm2, %v560_v3 }
 0x867   :  { %2497 = vmatpush3.bf16.msra.mxu0 %v3120_v39  ;;  %2500 = vmatprep.mubr.msk.bf16.mxu0 %vm3038_vm0, %v3037_v0 }
 0x868   :  { %2498 = vmatprep.subr.bf16.mxu0 %v3037_v0  ;;  %2513 = vmatpush3.bf16.msra.mxu1 %v3110_v30 }
 0x869   :  { %2514 = vmatprep.subr.bf16.mxu1 %v3037_v0  ;;  %2516 = vmatprep.mubr.msk.bf16.mxu1 %vm3038_vm0, %v3037_v0 }
 0x86b   :  { %2499 = vmatpush3.bf16.msra.mxu0 %v3125_v43 }
 0x86c   :  { %2528 = vmatprep.subr.bf16.mxu0 %v3037_v0  ;;  %2515 = vmatpush3.bf16.msra.mxu1 %v3113_v32 }
 0x86d   :  { %2520 = vmatprep.subr.bf16.mxu1 %v3037_v0  ;;  %v608_v5 = vpop.permute.xlu1 %607 }
 0x872   :  { %2501 = vmatmul.mubr.msk.bf16.vlgmr.msra.gmra.mrb[12].mxu0 %vm130_vm2, %v608_v5 }
 0x873   :  { %2529 = vmatpush3.bf16.msra.mxu0 %v3081_v4  ;;  %2532 = vmatprep.mubr.msk.bf16.mxu0 %vm3038_vm0, %v3037_v0 }
 0x874   :  { %2530 = vmatprep.subr.bf16.mxu0 %v3037_v0 }
 0x877   :  { %2531 = vmatpush3.bf16.msra.mxu0 %v3088_v8 }
 0x878   :  { %2536 = vmatprep.subr.bf16.mxu0 %v3037_v0 }
 0x939   :  { %v707_v6 = vpop.f32.mrb[12].mxu1 }
 0x93a   :  { %v714_v7 = vrot.slane %v707_v6, 5  ;;  %v2510_v9 = vpop.f32.mrb[13].mxu1 }
 0x93b   :  { %v710_v10 = vpop.f32.mrb[14].mxu1 }
 0x93c   :  { %v716_v11 = vadd.f32 %v714_v7, %v3102_v13  ;;  %v2511_v12 = vpop.f32.mrb[15].mxu1 }
 0x93e   :  { %2966 = vtanh.f32 %v716_v11 }
 0x945   :  { %v646_v14 = vpop.f32.mrb[12].mxu0 }
 0x946   :  { %v2899_v15 = vadd.f32 %v646_v14, %v3146_v50  ;;  %v2502_v16 = vpop.f32.mrb[13].mxu0 }
 0x947   :  { %v649_v17 = vpop.f32.mrb[14].mxu0 }
 0x948   :  { %v2967_v18 = vpop.eup %2966  ;;  %2968 = vtanh.f32 %v2899_v15  ;;  %v2503_v19 = vpop.f32.mrb[15].mxu0 }
 0x949   :  { %725 = vrot.lane.b32.xlu0 %v2967_v18, %s3040_s0  ;;  %v718_v22 = vmul.f32 0.5, %v2967_v18 }
 0x94b   :  { %v719_v23 = vadd.f32 0.5, %v718_v22 }
 0x94d   :  { %v723_v33 = vmul.f32 %v721_v31, %v719_v23 }
 0x952   :  { %v2969_v21 = vpop.eup %2968 }
 0x953   :  { %658 = vrot.lane.b32.xlu1 %v2969_v21, %s3040_s0  ;;  %v654_v26 = vmul.f32 0.5, %v2969_v21 }
 0x955   :  { %v655_v27 = vadd.f32 0.5, %v654_v26 }
 0x957   :  { %v656_v36 = vmul.f32 %v655_v27, %v3200_v56 }
 0x9bb   :  { %v726_v24 = vpop.permute.xlu0 %725 }
 0x9bc   :  { %v728_v25 = vmul.f32 %v726_v24, %v719_v23 }
 0x9be   :  { %730 = vrot.lane.b32.xlu0 %v728_v25, %s3041_s27 }
 0x9c5   :  { %v659_v28 = vpop.permute.xlu1 %658 }
 0x9c6   :  { %v661_v29 = vmul.f32 %v659_v28, %v655_v27 }
 0x9c8   :  { %663 = vrot.lane.b32.xlu1 %v661_v29, %s3041_s27 }
 0xa30   :  { %v731_v34 = vpop.permute.xlu0 %730 }
 0xa31   :  { %v3239_v35 = vadd.f32 %v731_v34, %v723_v33 }
 0xa33   :  { %2970 = vtanh.f32 %v3239_v35  ;;  %v907_v18 = vrot.slane %v3239_v35, 7 }
 0xa3a   :  { %v664_v37 = vpop.permute.xlu1 %663 }
 0xa3b   :  { %v3243_v38 = vadd.f32 %v664_v37, %v656_v36 }
 0xa3d   :  { %v2971_v40 = vpop.eup %2970  ;;  %2972 = vtanh.f32 %v3243_v38 }
 0xa3e   :  { %736 = vrot.lane.b32.xlu0 %v2971_v40, %s3040_s0 }
 0xa47   :  { %v2973_v41 = vpop.eup %2972 }
 0xa48   :  { %669 = vrot.lane.b32.xlu1 %v2973_v41, %s3040_s0 }
 0xab0   :  { %v737_v42 = vpop.permute.xlu0 %736 }
 0xab1   :  { %v739_v44 = vmul.f32 %v737_v42, %v719_v23 }
 0xab3   :  { %v740_v45 = vpack.c.bf16 %v739_v44, %v739_v44 }
 0xab5   :  { %v742_v46 = vshrl.u32 %v740_v45, 16 }
 0xab7   :  { %v744_v47 = vrot.slane %v742_v46, 1 }
 0xab9   :  { %745 = vrot.lane.b32.xlu0 %v744_v47, %s3041_s27 }
 0xaba   :  { %v670_v49 = vpop.permute.xlu1 %669 }
 0xabb   :  { %v672_v51 = vmul.f32 %v670_v49, %v655_v27 }
 0xabd   :  { %v791_v52 = vpack.c.bf16 %v672_v51, %v672_v51  ;;  %v1603_v53 = vrot.slane %v672_v51, 6 }
 0xabf   :  { %v3251_v55 = vsel %vm1622_vm4, %v1621_v54, %v1603_v53  ;;  %793 = vrot.lane.b32.xlu1 %v791_v52, %s3041_s27 }
 0xb2b   :  { %v746_v56 = vpop.permute.xlu0 %745 }
 0xb2c   :  { %2517 = vmatmul.mubr.msk.bf16.vlgmr.msra.gmra.mrb[16].mxu1 %vm130_vm2, %v746_v56  ;;  %2533 = vmatmul.mubr.msk.bf16.vlgmr.msra.gmra.mrb[16].mxu0 %vm130_vm2, %v746_v56 }
 0xb2d   :  { %2521 = vmatpush3.bf16.msra.mxu1 %v3120_v39  ;;  %2524 = vmatprep.mubr.msk.bf16.mxu1 %vm3038_vm0, %v3037_v0 }
 0xb2e   :  { %2522 = vmatprep.subr.bf16.mxu1 %v3037_v0  ;;  %2537 = vmatpush3.bf16.msra.mxu0 %v3110_v30 }
 0xb2f   :  { %2538 = vmatprep.subr.bf16.mxu0 %v3037_v0  ;;  %2540 = vmatprep.mubr.msk.bf16.mxu0 %vm3038_vm0, %v3037_v0 }
 0xb31   :  { %2523 = vmatpush3.bf16.msra.mxu1 %v3125_v43  ;;  %v794_v20 = vpop.permute.xlu1 %793 }
 0xb32   :  { %2552 = vmatprep.subr.bf16.mxu1 %v3037_v0  ;;  %2539 = vmatpush3.bf16.msra.mxu0 %v3113_v32 }
 0xb33   :  { %2544 = vmatprep.subr.bf16.mxu0 %v3037_v0 }
 0xb38   :  { %2525 = vmatmul.mubr.msk.bf16.vlgmr.msra.gmra.mrb[16].mxu1 %vm130_vm2, %v794_v20 }
 0xb39   :  { %2553 = vmatpush3.bf16.msra.mxu1 %v3081_v4  ;;  %2556 = vmatprep.mubr.msk.bf16.mxu1 %vm3038_vm0, %v3037_v0 }
 0xb3a   :  { %2554 = vmatprep.subr.bf16.mxu1 %v3037_v0 }
 0xb3d   :  { %2555 = vmatpush3.bf16.msra.mxu1 %v3088_v8 }
 0xb3e   :  { %2560 = vmatprep.subr.bf16.mxu1 %v3037_v0 }
 0xbff   :  { %v893_v57 = vpop.f32.mrb[16].mxu0 }
 0xc00   :  { %v900_v58 = vrot.slane %v893_v57, 4  ;;  %v2534_v59 = vpop.f32.mrb[17].mxu0 }
 0xc01   :  { %v896_v60 = vpop.f32.mrb[18].mxu0 }
 0xc02   :  { %v902_v61 = vadd.f32 %v900_v58, %v3102_v13  ;;  %v2535_v62 = vpop.f32.mrb[19].mxu0 }
 0xc04   :  { %2974 = vtanh.f32 %v902_v61 }
 0xc0b   :  { %v832_v63 = vpop.f32.mrb[16].mxu1 }
 0xc0c   :  { %v2900_v1 = vadd.f32 %v832_v63, %v3146_v50  ;;  %v2526_v2 = vpop.f32.mrb[17].mxu1 }
 0xc0d   :  { %v835_v3 = vpop.f32.mrb[18].mxu1 }
 0xc0e   :  { %v2975_v5 = vpop.eup %2974  ;;  %2976 = vtanh.f32 %v2900_v1  ;;  %v2527_v6 = vpop.f32.mrb[19].mxu1 }
 0xc0f   :  { %911 = vrot.lane.b32.xlu0 %v2975_v5, %s3040_s0  ;;  %v904_v9 = vmul.f32 0.5, %v2975_v5 }
 0xc11   :  { %v905_v10 = vadd.f32 0.5, %v904_v9 }
 0xc13   :  { %v909_v19 = vmul.f32 %v907_v18, %v905_v10 }
 0xc18   :  { %v2977_v7 = vpop.eup %2976 }
 0xc19   :  { %844 = vrot.lane.b32.xlu1 %v2977_v7, %s3040_s0  ;;  %v840_v14 = vmul.f32 0.5, %v2977_v7 }
 0xc1b   :  { %v841_v15 = vadd.f32 0.5, %v840_v14 }
 0xc1d   :  { %v842_v23 = vmul.f32 %v841_v15, %v3243_v38 }
 0xc81   :  { %v912_v11 = vpop.permute.xlu0 %911 }
 0xc82   :  { %v914_v12 = vmul.f32 %v912_v11, %v905_v10 }
 0xc84   :  { %916 = vrot.lane.b32.xlu0 %v914_v12, %s3041_s27 }
 0xc8b   :  { %v845_v16 = vpop.permute.xlu1 %844 }
 0xc8c   :  { %v847_v17 = vmul.f32 %v845_v16, %v841_v15 }
 0xc8e   :  { %849 = vrot.lane.b32.xlu1 %v847_v17, %s3041_s27 }
 0xcf6   :  { %v917_v21 = vpop.permute.xlu0 %916 }
 0xcf7   :  { %v3282_v22 = vadd.f32 %v917_v21, %v909_v19 }
 0xcf9   :  { %2978 = vtanh.f32 %v3282_v22  ;;  %v1091_v1 = vrot.slane %v3282_v22, 7 }
 0xd00   :  { %v850_v24 = vpop.permute.xlu1 %849 }
 0xd01   :  { %v3286_v25 = vadd.f32 %v850_v24, %v842_v23 }
 0xd03   :  { %v2979_v26 = vpop.eup %2978  ;;  %2980 = vtanh.f32 %v3286_v25 }
 0xd04   :  { %922 = vrot.lane.b32.xlu0 %v2979_v26, %s3040_s0 }
 0xd0d   :  { %v2981_v27 = vpop.eup %2980 }
 0xd0e   :  { %855 = vrot.lane.b32.xlu1 %v2981_v27, %s3040_s0 }
 0xd76   :  { %v923_v28 = vpop.permute.xlu0 %922 }
 0xd77   :  { %v925_v29 = vmul.f32 %v923_v28, %v905_v10 }
 0xd79   :  { %v926_v31 = vpack.c.bf16 %v925_v29, %v925_v29 }
 0xd7b   :  { %v928_v33 = vrot.slane %v926_v31, 2 }
 0xd7d   :  { %929 = vrot.lane.b32.xlu0 %v928_v33, %s3041_s27 }
 0xd80   :  { %v856_v34 = vpop.permute.xlu1 %855 }
 0xd81   :  { %v858_v35 = vmul.f32 %v856_v34, %v841_v15 }
 0xd83   :  { %v975_v36 = vpack.c.bf16 %v858_v35, %v858_v35  ;;  %v1606_v37 = vrot.slane %v858_v35, 5 }
 0xd85   :  { %v3293_v38 = vsel %vm1624_vm5, %v3251_v55, %v1606_v37  ;;  %977 = vrot.lane.b32.xlu1 %v975_v36, %s3041_s27 }
 0xdef   :  { %v930_v40 = vpop.permute.xlu0 %929 }
 0xdf0   :  { %2541 = vmatmul.mubr.msk.bf16.vlgmr.msra.gmra.mrb[20].mxu0 %vm130_vm2, %v930_v40  ;;  %2557 = vmatmul.mubr.msk.bf16.vlgmr.msra.gmra.mrb[20].mxu1 %vm130_vm2, %v930_v40 }
 0xdf1   :  { %2545 = vmatpush3.bf16.msra.mxu0 %v3120_v39  ;;  %2548 = vmatprep.mubr.msk.bf16.mxu0 %vm3038_vm0, %v3037_v0 }
 0xdf2   :  { %2546 = vmatprep.subr.bf16.mxu0 %v3037_v0  ;;  %2561 = vmatpush3.bf16.msra.mxu1 %v3110_v30 }
 0xdf3   :  { %2562 = vmatprep.subr.bf16.mxu1 %v3037_v0  ;;  %2564 = vmatprep.mubr.msk.bf16.mxu1 %vm3038_vm0, %v3037_v0 }
 0xdf5   :  { %2547 = vmatpush3.bf16.msra.mxu0 %v3125_v43 }
 0xdf6   :  { %2576 = vmatprep.subr.bf16.mxu0 %v3037_v0  ;;  %2563 = vmatpush3.bf16.msra.mxu1 %v3113_v32 }
 0xdf7   :  { %2568 = vmatprep.subr.bf16.mxu1 %v3037_v0  ;;  %v978_v41 = vpop.permute.xlu1 %977 }
 0xdfc   :  { %2549 = vmatmul.mubr.msk.bf16.vlgmr.msra.gmra.mrb[20].mxu0 %vm130_vm2, %v978_v41 }
 0xdfd   :  { %2577 = vmatpush3.bf16.msra.mxu0 %v3081_v4  ;;  %2580 = vmatprep.mubr.msk.bf16.mxu0 %vm3038_vm0, %v3037_v0 }
 0xdfe   :  { %2578 = vmatprep.subr.bf16.mxu0 %v3037_v0 }
 0xe01   :  { %2579 = vmatpush3.bf16.msra.mxu0 %v3088_v8 }
 0xe02   :  { %2584 = vmatprep.subr.bf16.mxu0 %v3037_v0 }
 0xec3   :  { %v1077_v42 = vpop.f32.mrb[20].mxu1 }
 0xec4   :  { %v1084_v44 = vrot.slane %v1077_v42, 3  ;;  %v2558_v45 = vpop.f32.mrb[21].mxu1 }
 0xec5   :  { %v1080_v46 = vpop.f32.mrb[22].mxu1 }
 0xec6   :  { %v1086_v47 = vadd.f32 %v1084_v44, %v3102_v13  ;;  %v2559_v48 = vpop.f32.mrb[23].mxu1 }
 0xec8   :  { %2982 = vtanh.f32 %v1086_v47 }
 0xecf   :  { %v1016_v49 = vpop.f32.mrb[20].mxu0 }
 0xed0   :  { %v2901_v51 = vadd.f32 %v1016_v49, %v3146_v50  ;;  %v2550_v52 = vpop.f32.mrb[21].mxu0 }
 0xed1   :  { %v1019_v53 = vpop.f32.mrb[22].mxu0 }
 0xed2   :  { %v2983_v54 = vpop.eup %2982  ;;  %2984 = vtanh.f32 %v2901_v51  ;;  %v2551_v55 = vpop.f32.mrb[23].mxu0 }
 0xed3   :  { %1095 = vrot.lane.b32.xlu0 %v2983_v54, %s3040_s0  ;;  %v1088_v20 = vmul.f32 0.5, %v2983_v54 }
 0xed5   :  { %v1089_v57 = vadd.f32 0.5, %v1088_v20 }
 0xed7   :  { %v1093_v2 = vmul.f32 %v1091_v1, %v1089_v57 }
 0xedc   :  { %v2985_v56 = vpop.eup %2984 }
 0xedd   :  { %1028 = vrot.lane.b32.xlu1 %v2985_v56, %s3040_s0  ;;  %v1024_v60 = vmul.f32 0.5, %v2985_v56 }
 0xedf   :  { %v1025_v61 = vadd.f32 0.5, %v1024_v60 }
 0xee1   :  { %v1026_v6 = vmul.f32 %v1025_v61, %v3286_v25 }
 0xf45   :  { %v1096_v58 = vpop.permute.xlu0 %1095 }
 0xf46   :  { %v1098_v59 = vmul.f32 %v1096_v58, %v1089_v57 }
 0xf48   :  { %1100 = vrot.lane.b32.xlu0 %v1098_v59, %s3041_s27 }
 0xf4f   :  { %v1029_v62 = vpop.permute.xlu1 %1028 }
 0xf50   :  { %v1031_v63 = vmul.f32 %v1029_v62, %v1025_v61 }
 0xf52   :  { %1033 = vrot.lane.b32.xlu1 %v1031_v63, %s3041_s27 }
 0xfba   :  { %v1101_v3 = vpop.permute.xlu0 %1100 }
 0xfbb   :  { %v3324_v5 = vadd.f32 %v1101_v3, %v1093_v2 }
 0xfbd   :  { %2986 = vtanh.f32 %v3324_v5  ;;  %v1277_v49 = vrot.slane %v3324_v5, 7 }
 0xfc4   :  { %v1034_v7 = vpop.permute.xlu1 %1033 }
 0xfc5   :  { %v3328_v9 = vadd.f32 %v1034_v7, %v1026_v6 }
 0xfc7   :  { %v2987_v10 = vpop.eup %2986  ;;  %2988 = vtanh.f32 %v3328_v9 }
 0xfc8   :  { %1106 = vrot.lane.b32.xlu0 %v2987_v10, %s3040_s0 }
 0xfd1   :  { %v2989_v11 = vpop.eup %2988 }
 0xfd2   :  { %1039 = vrot.lane.b32.xlu1 %v2989_v11, %s3040_s0 }
0x103a   :  { %v1107_v12 = vpop.permute.xlu0 %1106 }
0x103b   :  { %v1109_v14 = vmul.f32 %v1107_v12, %v1089_v57 }
0x103d   :  { %v1110_v15 = vpack.c.bf16 %v1109_v14, %v1109_v14 }
0x103f   :  { %v1112_v16 = vshrl.u32 %v1110_v15, 16 }
0x1041   :  { %v1114_v17 = vrot.slane %v1112_v16, 2 }
0x1043   :  { %1115 = vrot.lane.b32.xlu0 %v1114_v17, %s3041_s27 }
0x1044   :  { %v1040_v18 = vpop.permute.xlu1 %1039 }
0x1045   :  { %v1042_v19 = vmul.f32 %v1040_v18, %v1025_v61 }
0x1047   :  { %v1161_v21 = vpack.c.bf16 %v1042_v19, %v1042_v19  ;;  %v1609_v22 = vrot.slane %v1042_v19, 4 }
0x1049   :  { %v3335_v23 = vsel %vm1626_vm6, %v3293_v38, %v1609_v22  ;;  %1163 = vrot.lane.b32.xlu1 %v1161_v21, %s3041_s27 }
0x10b5   :  { %v1116_v24 = vpop.permute.xlu0 %1115 }
0x10b6   :  { %2565 = vmatmul.mubr.msk.bf16.vlgmr.msra.gmra.mrb[24].mxu1 %vm130_vm2, %v1116_v24  ;;  %2581 = vmatmul.mubr.msk.bf16.vlgmr.msra.gmra.mrb[24].mxu0 %vm130_vm2, %v1116_v24 }
0x10b7   :  { %2569 = vmatpush3.bf16.msra.mxu1 %v3120_v39  ;;  %2572 = vmatprep.mubr.msk.bf16.mxu1 %vm3038_vm0, %v3037_v0 }
0x10b8   :  { %2570 = vmatprep.subr.bf16.mxu1 %v3037_v0  ;;  %2585 = vmatpush3.bf16.msra.mxu0 %v3110_v30 }
0x10b9   :  { %2586 = vmatprep.subr.bf16.mxu0 %v3037_v0  ;;  %2588 = vmatprep.mubr.msk.bf16.mxu0 %vm3038_vm0, %v3037_v0 }
0x10bb   :  { %2571 = vmatpush3.bf16.msra.mxu1 %v3125_v43  ;;  %v1164_v25 = vpop.permute.xlu1 %1163 }
0x10bc   :  { %2600 = vmatprep.subr.bf16.mxu1 %v3037_v0  ;;  %2587 = vmatpush3.bf16.msra.mxu0 %v3113_v32 }
0x10bd   :  { %2592 = vmatprep.subr.bf16.mxu0 %v3037_v0 }
0x10c2   :  { %2573 = vmatmul.mubr.msk.bf16.vlgmr.msra.gmra.mrb[24].mxu1 %vm130_vm2, %v1164_v25 }
0x10c3   :  { %2601 = vmatpush3.bf16.msra.mxu1 %v3081_v4  ;;  %2604 = vmatprep.mubr.msk.bf16.mxu1 %vm3038_vm0, %v3037_v0 }
0x10c4   :  { %2602 = vmatprep.subr.bf16.mxu1 %v3037_v0 }
0x10c7   :  { %2603 = vmatpush3.bf16.msra.mxu1 %v3088_v8 }
0x10c8   :  { %2608 = vmatprep.subr.bf16.mxu1 %v3037_v0 }
0x1189   :  { %v1263_v26 = vpop.f32.mrb[24].mxu0 }
0x118a   :  { %v1270_v27 = vrot.slane %v1263_v26, 2  ;;  %v2582_v28 = vpop.f32.mrb[25].mxu0 }
0x118b   :  { %v1266_v29 = vpop.f32.mrb[26].mxu0 }
0x118c   :  { %v1272_v31 = vadd.f32 %v1270_v27, %v3102_v13  ;;  %v2583_v33 = vpop.f32.mrb[27].mxu0 }
0x118e   :  { %2990 = vtanh.f32 %v1272_v31 }
0x1195   :  { %v1202_v34 = vpop.f32.mrb[24].mxu1 }
0x1196   :  { %v2902_v4 = vadd.f32 %v1202_v34, %v3146_v50  ;;  %v2574_v35 = vpop.f32.mrb[25].mxu1 }
0x1197   :  { %v1205_v36 = vpop.f32.mrb[26].mxu1 }
0x1198   :  { %v2991_v37 = vpop.eup %2990  ;;  %2992 = vtanh.f32 %v2902_v4  ;;  %v2575_v38 = vpop.f32.mrb[27].mxu1 }
0x1199   :  { %1281 = vrot.lane.b32.xlu0 %v2991_v37, %s3040_s0  ;;  %v1274_v40 = vmul.f32 0.5, %v2991_v37 }
0x119b   :  { %v1275_v41 = vadd.f32 0.5, %v1274_v40 }
0x119d   :  { %v1279_v51 = vmul.f32 %v1277_v49, %v1275_v41 }
0x11a2   :  { %v2993_v8 = vpop.eup %2992 }
0x11a3   :  { %1214 = vrot.lane.b32.xlu1 %v2993_v8, %s3040_s0  ;;  %v1210_v45 = vmul.f32 0.5, %v2993_v8 }
0x11a5   :  { %v1211_v46 = vadd.f32 0.5, %v1210_v45 }
0x11a7   :  { %v1212_v54 = vmul.f32 %v1211_v46, %v3328_v9 }
0x120b   :  { %v1282_v42 = vpop.permute.xlu0 %1281 }
0x120c   :  { %v1284_v44 = vmul.f32 %v1282_v42, %v1275_v41 }
0x120e   :  { %1286 = vrot.lane.b32.xlu0 %v1284_v44, %s3041_s27 }
0x1215   :  { %v1215_v47 = vpop.permute.xlu1 %1214 }
0x1216   :  { %v1217_v48 = vmul.f32 %v1215_v47, %v1211_v46 }
0x1218   :  { %1219 = vrot.lane.b32.xlu1 %v1217_v48, %s3041_s27 }
0x1280   :  { %v1287_v52 = vpop.permute.xlu0 %1286 }
0x1281   :  { %v3366_v53 = vadd.f32 %v1287_v52, %v1279_v51 }
0x1283   :  { %2994 = vtanh.f32 %v3366_v53  ;;  %v1461_v28 = vrot.slane %v3366_v53, 7 }
0x128a   :  { %v1220_v55 = vpop.permute.xlu1 %1219 }
0x128b   :  { %v3370_v56 = vadd.f32 %v1220_v55, %v1212_v54 }
0x128d   :  { %v2995_v20 = vpop.eup %2994  ;;  %2996 = vtanh.f32 %v3370_v56 }
0x128e   :  { %1292 = vrot.lane.b32.xlu0 %v2995_v20, %s3040_s0 }
0x1297   :  { %v2997_v57 = vpop.eup %2996 }
0x1298   :  { %1225 = vrot.lane.b32.xlu1 %v2997_v57, %s3040_s0 }
0x1300   :  { %v1293_v58 = vpop.permute.xlu0 %1292 }
0x1301   :  { %v1295_v59 = vmul.f32 %v1293_v58, %v1275_v41 }
0x1303   :  { %v1296_v60 = vpack.c.bf16 %v1295_v59, %v1295_v59 }
0x1305   :  { %v1298_v61 = vrot.slane %v1296_v60, 3 }
0x1307   :  { %1299 = vrot.lane.b32.xlu0 %v1298_v61, %s3041_s27 }
0x130a   :  { %v1226_v62 = vpop.permute.xlu1 %1225 }
0x130b   :  { %v1228_v63 = vmul.f32 %v1226_v62, %v1211_v46  ;;  %v1638_v62 = vld [vmem:[#allocation2 + $0x98] sm:$0xff] }
0x130d   :  { %v1345_v1 = vpack.c.bf16 %v1228_v63, %v1228_v63  ;;  %v1612_v2 = vrot.slane %v1228_v63, 3  ;;  %v1639_v63 = vld [vmem:[#allocation2 + $0xa0] sm:$0xff] }
0x130f   :  { %1347 = vrot.lane.b32.xlu1 %v1345_v1, %s3041_s27  ;;  %v3378_v3 = vsel %vm1628_vm7, %v3335_v23, %v1612_v2  ;;  %v2790_v1 = vpack.c.bf16 %v1639_v63, %v1638_v62  ;;  %v1634_v2 = vld [vmem:[#allocation2 + $0x78] sm:$0xff] }
0x1379   :  { %v1300_v5 = vpop.permute.xlu0 %1299 }
0x137a   :  { %2589 = vmatmul.mubr.msk.bf16.vlgmr.msra.gmra.mrb[28].mxu0 %vm130_vm2, %v1300_v5  ;;  %2605 = vmatmul.mubr.msk.bf16.vlgmr.msra.gmra.mrb[28].mxu1 %vm130_vm2, %v1300_v5  ;;  %v3428_v5 = vld [vmem:[%s3486_s1] sm:$0xff] }
0x137b   :  { %2593 = vmatpush3.bf16.msra.mxu0 %v3120_v39  ;;  %2596 = vmatprep.mubr.msk.bf16.mxu0 %vm3038_vm0, %v3037_v0 }
0x137c   :  { %2594 = vmatprep.subr.bf16.mxu0 %v3037_v0  ;;  %2609 = vmatpush3.bf16.msra.mxu1 %v3110_v30 }
0x137d   :  { %2610 = vmatprep.subr.bf16.mxu1 %v3037_v0  ;;  %2612 = vmatprep.mubr.msk.bf16.mxu1 %vm3038_vm0, %v3037_v0 }
0x137f   :  { %2595 = vmatpush3.bf16.msra.mxu0 %v3125_v43 }
0x1380   :  { %2611 = vmatpush3.bf16.msra.mxu1 %v3113_v32 }
0x1381   :  { %2616 = vmatprep.subr.bf16.mxu1 %v3037_v0  ;;  %v1348_v6 = vpop.permute.xlu1 %1347 }
0x1386   :  { %2597 = vmatmul.mubr.msk.bf16.vlgmr.msra.gmra.mrb[28].mxu0 %vm130_vm2, %v1348_v6 }
0x1387   :  { %2628 = vmatprep.mubr.msk.f32.mxu0 %vm3038_vm0, %v3037_v0 }
0x144d   :  { %v1447_v7 = vpop.f32.mrb[28].mxu1 }
0x144e   :  { %v1454_v9 = vrot.slane %v1447_v7, 1  ;;  %v2606_v30 = vpop.f32.mrb[29].mxu1  ;;  %v1636_v7 = vld [vmem:[#allocation2 + $0x88] sm:$0xff] }
0x144f   :  { %v1450_v10 = vpop.f32.mrb[30].mxu1 }
0x1450   :  { %v1456_v11 = vadd.f32 %v1454_v9, %v3102_v13  ;;  %v2607_v12 = vpop.f32.mrb[31].mxu1  ;;  %v1637_v9 = vld [vmem:[#allocation2 + $0x90] sm:$0xff] }
0x1451   :  { %v2796_v10 = vpack.c.bf16 %v1637_v9, %v1636_v7  ;;  %v1797_v12 = vld [vmem:[#allocation2 + $0xb8] sm:$0xff]  ;;  %v1902_v9 = vld [vmem:[#allocation2 + $0x1a8] sm:$0xff] }
0x1452   :  { %2998 = vtanh.f32 %v1456_v11  ;;  %v1796_v11 = vld [vmem:[#allocation2 + $0xb0] sm:$0xff] }
0x1459   :  { %v1386_v14 = vpop.f32.mrb[28].mxu0 }
0x145a   :  { %v2903_v15 = vadd.f32 %v1386_v14, %v3146_v50  ;;  %v2598_v32 = vpop.f32.mrb[29].mxu0  ;;  %v1798_v14 = vld [vmem:[#allocation2 + $0xc0] sm:$0xff] }
0x145b   :  { %v1389_v16 = vpop.f32.mrb[30].mxu0  ;;  %v1799_v32 = vld [vmem:[#allocation2 + $0xc8] sm:$0xff] }
0x145c   :  { %v2999_v17 = vpop.eup %2998  ;;  %3000 = vtanh.f32 %v2903_v15  ;;  %v2599_v18 = vpop.f32.mrb[31].mxu0  ;;  %v2799_v15 = vpack.c.bf16 %v1797_v12, %v1796_v11  ;;  %v2802_v16 = vpack.c.bf16 %v1799_v32, %v1798_v14  ;;  %v2269_v11 = vld [vmem:[#allocation2 + $0x130] ss:$0 sm:$0xff]  ;;  %v1980_v12 = vld [vmem:[#allocation2 + $0x1c0] sm:$0xff]  ;;  %v1981_v14 = vld [vmem:[#allocation2 + $0x1c8] sm:$0xff] }
0x145d   :  { %1465 = vrot.lane.b32.xlu0 %v2999_v17, %s3040_s0  ;;  %v1458_v21 = vmul.f32 0.5, %v2999_v17  ;;  %v1800_v17 = vld [vmem:[#allocation2 + $0xd0] sm:$0xff]  ;;  %v1801_v18 = vld [vmem:[#allocation2 + $0xd8] sm:$0xff] }
0x145f   :  { %v1459_v22 = vadd.f32 0.5, %v1458_v21  ;;  %v2805_v21 = vpack.c.bf16 %v1801_v18, %v1800_v17  ;;  %v2850_v17 = vpack.c.bf16 %v1981_v14, %v1980_v12  ;;  %v2272_v12 = vld [vmem:[#allocation2 + $0x250] ss:$0 sm:$0xff] }
0x1461   :  { %v1463_v29 = vmul.f32 %v1461_v28, %v1459_v22  ;;  %v1805_v28 = vld [vmem:[#allocation2 + $0xf8] sm:$0xff] }
0x1466   :  { %v3001_v19 = vpop.eup %3000 }
0x1467   :  { %1398 = vrot.lane.b32.xlu1 %v3001_v19, %s3040_s0  ;;  %v1394_v13 = vmul.f32 0.5, %v3001_v19 }
0x1469   :  { %v1395_v25 = vadd.f32 0.5, %v1394_v13 }
0x146b   :  { %v1396_v34 = vmul.f32 %v1395_v25, %v3370_v56 }
0x14cf   :  { %v1466_v23 = vpop.permute.xlu0 %1465 }
0x14d0   :  { %v1468_v24 = vmul.f32 %v1466_v23, %v1459_v22  ;;  %v1802_v23 = vld [vmem:[#allocation2 + $0xe0] sm:$0xff] }
0x14d2   :  { %1470 = vrot.lane.b32.xlu0 %v1468_v24, %s3041_s27  ;;  %v1803_v24 = vld [vmem:[#allocation2 + $0xe8] sm:$0xff] }
0x14d9   :  { %v1399_v26 = vpop.permute.xlu1 %1398 }
0x14da   :  { %v1401_v27 = vmul.f32 %v1399_v26, %v1395_v25 }
0x14dc   :  { %1403 = vrot.lane.b32.xlu1 %v1401_v27, %s3041_s27  ;;  %v1804_v27 = vld [vmem:[#allocation2 + $0xf0] sm:$0xff] }
0x1544   :  { %v1471_v31 = vpop.permute.xlu0 %1470 }
0x1545   :  { %v1473_v33 = vadd.f32 %v1471_v31, %v1463_v29  ;;  %v2811_v29 = vpack.c.bf16 %v1805_v28, %v1804_v27  ;;  %v1806_v31 = vld [vmem:[#allocation2 + $0x100] sm:$0xff] }
0x1546   :  { %v1988_v28 = vld [vmem:[#allocation2 + $0x200] sm:$0xff] }
0x1547   :  { %3002 = vtanh.f32 %v1473_v33  ;;  %v1807_v33 = vld [vmem:[#allocation2 + $0x108] sm:$0xff] }
0x154e   :  { %v1404_v4 = vpop.permute.xlu1 %1403 }
0x154f   :  { %v1406_v35 = vadd.f32 %v1404_v4, %v1396_v34  ;;  %v2814_v34 = vpack.c.bf16 %v1807_v33, %v1806_v31  ;;  %v1990_v33 = vld [vmem:[#allocation2 + $0x210] sm:$0xff] }
0x1551   :  { %v3003_v36 = vpop.eup %3002  ;;  %3004 = vtanh.f32 %v1406_v35 }
0x1552   :  { %1476 = vrot.lane.b32.xlu0 %v3003_v36, %s3040_s0 }
0x155b   :  { %v3005_v37 = vpop.eup %3004 }
0x155c   :  { %1409 = vrot.lane.b32.xlu1 %v3005_v37, %s3040_s0  ;;  %v1808_v37 = vld [vmem:[#allocation2 + $0x110] sm:$0xff] }
0x15c4   :  { %v1477_v38 = vpop.permute.xlu0 %1476 }
0x15c5   :  { %v1479_v8 = vmul.f32 %v1477_v38, %v1459_v22  ;;  %v1809_v38 = vld [vmem:[#allocation2 + $0x118] sm:$0xff] }
0x15c7   :  { %v1480_v40 = vpack.c.bf16 %v1479_v8, %v1479_v8  ;;  %v2817_v8 = vpack.c.bf16 %v1809_v38, %v1808_v37  ;;  %v1996_v38 = vld [vmem:[#allocation2 + $0x240] sm:$0xff] }
0x15c9   :  { %v1482_v41 = vshrl.u32 %v1480_v40, 16  ;;  %v1810_v40 = vld [vmem:[#allocation2 + $0x120] sm:$0xff] }
0x15cb   :  { %v1484_v42 = vrot.slane %v1482_v41, 3  ;;  %v1811_v41 = vld [vmem:[#allocation2 + $0x128] sm:$0xff] }
0x15cd   :  { %1485 = vrot.lane.b32.xlu0 %v1484_v42, %s3041_s27  ;;  %v2820_v42 = vpack.c.bf16 %v1811_v41, %v1810_v40  ;;  %v1994_v41 = vld [vmem:[#allocation2 + $0x230] sm:$0xff] }
0x15ce   :  { %v1410_v44 = vpop.permute.xlu1 %1409 }
0x15cf   :  { %v1412_v45 = vmul.f32 %v1410_v44, %v1395_v25  ;;  %v2808_v25 = vpack.c.bf16 %v1803_v24, %v1802_v23  ;;  %v1888_v44 = vld [vmem:[#allocation2 + $0x138] sm:$0xff]  ;;  %v1984_v23 = vld [vmem:[#allocation2 + $0x1e0] sm:$0xff]  ;;  %v1985_v24 = vld [vmem:[#allocation2 + $0x1e8] sm:$0xff] }
0x15d1   :  { %v1531_v46 = vpack.c.bf16 %v1412_v45, %v1412_v45  ;;  %v1615_v47 = vrot.slane %v1412_v45, 2  ;;  %v1889_v45 = vld [vmem:[#allocation2 + $0x140] sm:$0xff] }
0x15d3   :  { %1533 = vrot.lane.b32.xlu1 %v1531_v46, %s3041_s27  ;;  %v3409_v48 = vsel %vm1630_vm8, %v3378_v3, %v1615_v47  ;;  %v1635_v3 = vld [vmem:[#allocation2 + $0x80] sm:$0xff]  ;;  %v1890_v46 = vld [vmem:[#allocation2 + $0x148] sm:$0xff]  ;;  %v2823_v47 = vpack.c.bf16 %v1889_v45, %v1888_v44  ;;  %v2145_v45 = vld [vmem:[#allocation2 + $0x258] sm:$0xff] }
0x15d4   :  { %v2793_v6 = vpack.c.bf16 %v1635_v3, %v1634_v2 }
0x163f   :  { %v1486_v49 = vpop.permute.xlu0 %1485 }
0x1640   :  { %2613 = vmatmul.mubr.msk.bf16.vlgmr.msra.gmra.mrb[32].mxu1 %vm130_vm2, %v1486_v49 }
0x1641   :  { %2617 = vmatpush3.bf16.msra.mxu1 %v3120_v39  ;;  %2620 = vmatprep.mubr.msk.bf16.mxu1 %vm3038_vm0, %v3037_v0 }
0x1642   :  { %2618 = vmatprep.subr.bf16.mxu1 %v3037_v0 }
0x1645   :  { %2619 = vmatpush3.bf16.msra.mxu1 %v3125_v43  ;;  %v1534_v51 = vpop.permute.xlu1 %1533 }
0x164c   :  { %2621 = vmatmul.mubr.msk.bf16.vlgmr.msra.gmra.mrb[32].mxu1 %vm130_vm2, %v1534_v51  ;;  %v1892_v51 = vld [vmem:[#allocation2 + $0x158] sm:$0xff] }
0x164d   :  { %2674 = vmatprep.mubr.msk.f32.mxu1 %vm3038_vm0, %v3037_v0 }
0x171f   :  { %v1572_v52 = vpop.f32.mrb[32].mxu1 }
0x1720   :  { %v2904_v53 = vadd.f32 %v1572_v52, %v3146_v50  ;;  %v2622_v54 = vpop.f32.mrb[33].mxu1  ;;  %v3042_v50 = vmov 0.0|0.0   ;;  %v1893_v52 = vld [vmem:[#allocation2 + $0x160] sm:$0xff] }
0x1721   :  { %v1575_v55 = vpop.f32.mrb[34].mxu1  ;;  %2789 = vmatprep.subr.bf16.mxu0 %v3042_v50  ;;  %2798 = vmatprep.subr.bf16.mxu1 %v3042_v50  ;;  %v1894_v54 = vld [vmem:[#allocation2 + $0x168] sm:$0xff] }
0x1722   :  { %3006 = vtanh.f32 %v2904_v53  ;;  %v2623_v39 = vpop.f32.mrb[35].mxu1  ;;  %2791 = vmatpush3.bf16.msra.mxu0 %v2790_v1  ;;  %2800 = vmatpush3.bf16.msra.mxu1 %v2799_v15  ;;  %v2829_v53 = vpack.c.bf16 %v1893_v52, %v1892_v51  ;;  %v1895_v55 = vld [vmem:[#allocation2 + $0x170] sm:$0xff]  ;;  %v2268_v1 = vld [vmem:[#allocation2 + $0xa8] ss:$0 sm:$0xff]  ;;  %v2149_v52 = vld [vmem:[#allocation2 + $0x278] sm:$0xff] }
0x1723   :  { %2792 = vmatprep.subr.bf16.mxu0 %v3042_v50  ;;  %2801 = vmatprep.subr.bf16.mxu1 %v3042_v50  ;;  %v2832_v39 = vpack.c.bf16 %v1895_v55, %v1894_v54  ;;  %v2151_v55 = vld [vmem:[#allocation2 + $0x288] sm:$0xff] }
0x1725   :  { %2629 = vmatmul.mubr.msk.f32.vlgmr.msra.gmra.mrb[2].mxu0 %vm1640_vm9, %v3428_v5 }
0x1726   :  { %2794 = vmatpush3.bf16.msra.mxu0 %v2793_v6  ;;  %2639 = vmatprep.mubr.msk.f32.mxu0 %vm3038_vm0, %v3037_v0 }
0x1727   :  { %2795 = vmatprep.subr.bf16.mxu0 %v3042_v50  ;;  %2803 = vmatpush3.bf16.msra.mxu1 %v2802_v16 }
0x1728   :  { %2804 = vmatprep.subr.bf16.mxu1 %v3042_v50 }
0x172a   :  { %2797 = vmatpush3.bf16.msra.mxu0 %v2796_v10 }
0x172b   :  { %2822 = vmatprep.subr.bf16.mxu0 %v3042_v50  ;;  %2806 = vmatpush3.bf16.msra.mxu1 %v2805_v21  ;;  %v1983_v21 = vld [vmem:[#allocation2 + $0x1d8] sm:$0xff] }
0x172c   :  { %v3007_v56 = vpop.eup %3006  ;;  %2807 = vmatprep.subr.bf16.mxu1 %v3042_v50 }
0x172d   :  { %1584 = vrot.lane.b32.xlu0 %v3007_v56, %s3040_s0  ;;  %v1580_v20 = vmul.f32 0.5, %v3007_v56  ;;  %v1896_v56 = vld [vmem:[#allocation2 + $0x178] sm:$0xff] }
0x172f   :  { %v1581_v57 = vadd.f32 0.5, %v1580_v20  ;;  %2809 = vmatpush3.bf16.msra.mxu1 %v2808_v25  ;;  %v1897_v20 = vld [vmem:[#allocation2 + $0x180] sm:$0xff]  ;;  %v1986_v25 = vld [vmem:[#allocation2 + $0x1f0] sm:$0xff] }
0x1730   :  { %2810 = vmatprep.subr.bf16.mxu1 %v3042_v50 }
0x1731   :  { %v1582_v59 = vmul.f32 %v1581_v57, %v1406_v35 }
0x1733   :  { %2812 = vmatpush3.bf16.msra.mxu1 %v2811_v29  ;;  %v1989_v29 = vld [vmem:[#allocation2 + $0x208] sm:$0xff] }
0x1734   :  { %2813 = vmatprep.subr.bf16.mxu1 %v3042_v50  ;;  %v2862_v31 = vpack.c.bf16 %v1989_v29, %v1988_v28 }
0x1737   :  { %2815 = vmatpush3.bf16.msra.mxu1 %v2814_v34  ;;  %v1991_v34 = vld [vmem:[#allocation2 + $0x218] sm:$0xff] }
0x1738   :  { %2816 = vmatprep.subr.bf16.mxu1 %v3042_v50 }
0x173b   :  { %2818 = vmatpush3.bf16.msra.mxu1 %v2817_v8  ;;  %v1997_v8 = vld [vmem:[#allocation2 + $0x248] sm:$0xff] }
0x173c   :  { %2819 = vmatprep.subr.bf16.mxu1 %v3042_v50  ;;  %v2847_v40 = vpack.c.bf16 %v1997_v8, %v1996_v38 }
0x173f   :  { %2821 = vmatpush3.bf16.msra.mxu1 %v2820_v42  ;;  %v1995_v42 = vld [vmem:[#allocation2 + $0x238] sm:$0xff] }
0x1740   :  { %2846 = vmatprep.subr.bf16.mxu1 %v3042_v50  ;;  %v2871_v44 = vpack.c.bf16 %v1995_v42, %v1994_v41 }
0x179f   :  { %v1585_v58 = vpop.permute.xlu0 %1584 }
0x17a0   :  { %v1587_v43 = vmul.f32 %v1585_v58, %v1581_v57  ;;  %v1898_v58 = vld [vmem:[#allocation2 + $0x188] sm:$0xff] }
0x17a2   :  { %1589 = vrot.lane.b32.xlu1 %v1587_v43, %s3041_s27  ;;  %v1899_v43 = vld [vmem:[#allocation2 + $0x190] sm:$0xff] }
0x17f8   :  { %v1710_v4 = vpop.f32.mrb[2].mxu0 }
0x17f9   :  { %v2630_v35 = vpop.f32.mrb[3].mxu0 }
0x17fa   :  { %v1992_v35 = vld [vmem:[#allocation2 + $0x220] sm:$0xff] }
0x1814   :  { %v1590_v60 = vpop.permute.xlu1 %1589 }
0x1815   :  { %v1592_v61 = vadd.f32 %v1590_v60, %v1582_v59  ;;  %v2838_v59 = vpack.c.bf16 %v1899_v43, %v1898_v58  ;;  %v1900_v60 = vld [vmem:[#allocation2 + $0x198] sm:$0xff]  ;;  %v2156_v58 = vld [vmem:[#allocation2 + $0x2b0] sm:$0xff] }
0x1817   :  { %3008 = vtanh.f32 %v1592_v61  ;;  %v1901_v61 = vld [vmem:[#allocation2 + $0x1a0] sm:$0xff] }
0x1818   :  { %v2841_v62 = vpack.c.bf16 %v1901_v61, %v1900_v60 }
0x1821   :  { %v3009_v30 = vpop.eup %3008 }
0x1822   :  { %1595 = vrot.lane.b32.xlu0 %v3009_v30, %s3040_s0  ;;  %v1903_v30 = vld [vmem:[#allocation2 + $0x1b0] sm:$0xff] }
0x1823   :  { %v2844_v10 = vpack.c.bf16 %v1903_v30, %v1902_v9  ;;  %v2159_v9 = vld [vmem:[#allocation2 + $0x2c8] sm:$0xff]  ;;  %v2160_v30 = vld [vmem:[#allocation2 + $0x2d0] sm:$0xff] }
0x1894   :  { %v1596_v19 = vpop.permute.xlu0 %1595 }
0x1895   :  { %v1598_v22 = vmul.f32 %v1596_v19, %v1581_v57  ;;  %v2835_v57 = vpack.c.bf16 %v1897_v20, %v1896_v56  ;;  %v1982_v19 = vld [vmem:[#allocation2 + $0x1d0] sm:$0xff]  ;;  %v2153_v56 = vld [vmem:[#allocation2 + $0x298] sm:$0xff] }
0x1897   :  { %v1618_v13 = vrot.slane %v1598_v22, 1  ;;  %v2853_v22 = vpack.c.bf16 %v1983_v21, %v1982_v19 }
0x1899   :  { %v1633_v26 = vsel %vm1632_vm10, %v3409_v48, %v1618_v13  ;;  %v1891_v48 = vld [vmem:[#allocation2 + $0x150] sm:$0xff]  ;;  %v2856_v13 = vpack.c.bf16 %v1985_v24, %v1984_v23 }
0x189a   :  { %1715 = vrot.lane.b32.xlu1 %v1633_v26, %s3041_s27  ;;  %v2826_v49 = vpack.c.bf16 %v1891_v48, %v1890_v46  ;;  %v1987_v26 = vld [vmem:[#allocation2 + $0x1f8] sm:$0xff]  ;;  %v2146_v46 = vld [vmem:[#allocation2 + $0x260] sm:$0xff] }
0x189b   :  { %v2859_v27 = vpack.c.bf16 %v1987_v26, %v1986_v25  ;;  %v2874_v48 = vpack.c.bf16 %v2146_v46, %v2145_v45 }
0x190c   :  { %v1716_v36 = vpop.permute.xlu1 %1715 }
0x190d   :  { %2640 = vmatmul.mubr.msk.f32.vlgmr.msra.gmra.mrb[32].mxu0 %vm130_vm2, %v1716_v36  ;;  %v1993_v36 = vld [vmem:[#allocation2 + $0x228] sm:$0xff] }
0x190e   :  { %2709 = vmatprep.mubr.msk.f32.mxu0 %vm3038_vm0, %v3037_v0  ;;  %2824 = vmatpush3.bf16.msra.mxu0 %v2823_v47  ;;  %v2868_v37 = vpack.c.bf16 %v1993_v36, %v1992_v35  ;;  %v2147_v47 = vld [vmem:[#allocation2 + $0x268] sm:$0xff] }
0x190f   :  { %2825 = vmatprep.subr.bf16.mxu0 %v3042_v50 }
0x1912   :  { %2827 = vmatpush3.bf16.msra.mxu0 %v2826_v49  ;;  %v2148_v49 = vld [vmem:[#allocation2 + $0x270] sm:$0xff] }
0x1913   :  { %2828 = vmatprep.subr.bf16.mxu0 %v3042_v50  ;;  %v2877_v51 = vpack.c.bf16 %v2148_v49, %v2147_v47 }
0x1916   :  { %2830 = vmatpush3.bf16.msra.mxu0 %v2829_v53  ;;  %v2150_v53 = vld [vmem:[#allocation2 + $0x280] sm:$0xff] }
0x1917   :  { %2831 = vmatprep.subr.bf16.mxu0 %v3042_v50  ;;  %v2880_v54 = vpack.c.bf16 %v2150_v53, %v2149_v52 }
0x191a   :  { %2833 = vmatpush3.bf16.msra.mxu0 %v2832_v39 }
0x191b   :  { %2834 = vmatprep.subr.bf16.mxu0 %v3042_v50 }
0x191e   :  { %2836 = vmatpush3.bf16.msra.mxu0 %v2835_v57  ;;  %v2155_v57 = vld [vmem:[#allocation2 + $0x2a8] sm:$0xff] }
0x191f   :  { %2837 = vmatprep.subr.bf16.mxu0 %v3042_v50  ;;  %v2889_v43 = vpack.c.bf16 %v2156_v58, %v2155_v57 }
0x1922   :  { %2839 = vmatpush3.bf16.msra.mxu0 %v2838_v59  ;;  %v2270_v59 = vld [vmem:[#allocation2 + $0x1b8] ss:$0 sm:$0xff] }
0x1923   :  { %2840 = vmatprep.subr.bf16.mxu0 %v3042_v50 }
0x1926   :  { %2842 = vmatpush3.bf16.msra.mxu0 %v2841_v62 }
0x1927   :  { %2843 = vmatprep.subr.bf16.mxu0 %v3042_v50 }
0x192a   :  { %2845 = vmatpush3.bf16.msra.mxu0 %v2844_v10  ;;  %v2895_v10 = vpack.c.bf16 %v2160_v30, %v2159_v9 }
0x192b   :  { %2849 = vmatprep.subr.bf16.mxu0 %v3042_v50 }
0x19e0   :  { %v1785_v63 = vpop.f32.mrb[32].mxu0 }
0x19e1   :  { %v1786_v2 = vadd.f32 %v1785_v63, %v1710_v4  ;;  %v2641_v3 = vpop.f32.mrb[33].mxu0  ;;  %v2865_v4 = vpack.c.bf16 %v1991_v34, %v1990_v33 }
0x19e3   :  { %v1794_v6 = vadd.f32 %v2268_v1, %v1786_v2  ;;  %v2157_v1 = vld [vmem:[#allocation2 + $0x2b8] sm:$0xff]  ;;  %v2158_v2 = vld [vmem:[#allocation2 + $0x2c0] sm:$0xff] }
0x19e4   :  { %v2892_v3 = vpack.c.bf16 %v2158_v2, %v2157_v1 }
0x19e5   :  { %v1795_v7 = vmax.f32 %v1794_v6, 0.0 }
0x19e7   :  { %2675 = vmatmul.mubr.f32.vlgmr.msra.gmra.mrb[36].mxu1 %v1795_v7 }
0x19e8   :  { %2716 = vmatprep.mubr.msk.f32.mxu1 %vm3038_vm0, %v3037_v0  ;;  %2848 = vmatpush3.bf16.msra.mxu1 %v2847_v40 }
0x19e9   :  { %2873 = vmatprep.subr.bf16.mxu1 %v3042_v50 }
0x19eb   :  { %2717 = vmatmul.mubr.msk.f32.vlgmr.msra.gmra.mrb[38].mxu1 %vm1640_vm9, %v3428_v5  ;;  %v2152_v5 = vld [vmem:[#allocation2 + $0x290] sm:$0xff] }
0x19ec   :  { %2786 = vmatprep.mubr.msk.f32.mxu1 %vm3038_vm0, %v3037_v0  ;;  %2875 = vmatpush3.bf16.msra.mxu1 %v2874_v48  ;;  %v2883_v39 = vpack.c.bf16 %v2152_v5, %v2151_v55 }
0x19ed   :  { %2876 = vmatprep.subr.bf16.mxu1 %v3042_v50 }
0x19f0   :  { %2878 = vmatpush3.bf16.msra.mxu1 %v2877_v51 }
0x19f1   :  { %2879 = vmatprep.subr.bf16.mxu1 %v3042_v50 }
0x19f4   :  { %2881 = vmatpush3.bf16.msra.mxu1 %v2880_v54 }
0x19f5   :  { %2882 = vmatprep.subr.bf16.mxu1 %v3042_v50 }
0x19f8   :  { %2884 = vmatpush3.bf16.msra.mxu1 %v2883_v39 }
0x19f9   :  { %2885 = vmatprep.subr.bf16.mxu1 %v3042_v50 }
0x1aba   :  { %v1883_v15 = vpop.f32.mrb[36].mxu1 }
0x1abb   :  { %v1884_v32 = vadd.f32 %v2269_v11, %v1883_v15  ;;  %v2676_v16 = vpop.f32.mrb[37].mxu1 }
0x1abd   :  { %v1887_v18 = vmax.f32 %v1884_v32, 0.0 }
0x1abe   :  { %v2064_v6 = vpop.f32.mrb[38].mxu1 }
0x1abf   :  { %2710 = vmatmul.mubr.f32.vlgmr.msra.gmra.mrb[34].mxu0 %v1887_v18  ;;  %v2718_v7 = vpop.f32.mrb[39].mxu1 }
0x1ac0   :  { %2851 = vmatpush3.bf16.msra.mxu0 %v2850_v17  ;;  %2751 = vmatprep.mubr.msk.f32.mxu0 %vm3038_vm0, %v3037_v0  ;;  %v2154_v0 = vld [vmem:[#allocation2 + $0x2a0] sm:$0xff]  ;;  %v2273_v17 = vld [vmem:[#allocation2 + $0x2d8] ss:$0 sm:$0xff] }
0x1ac1   :  { %2852 = vmatprep.subr.bf16.mxu0 %v3042_v50  ;;  %v2886_v20 = vpack.c.bf16 %v2154_v0, %v2153_v56 }
0x1ac3   :  { %2887 = vmatpush3.bf16.msra.mxu1 %v2886_v20 }
0x1ac4   :  { %2854 = vmatpush3.bf16.msra.mxu0 %v2853_v22  ;;  %2888 = vmatprep.subr.bf16.mxu1 %v3042_v50 }
0x1ac5   :  { %2855 = vmatprep.subr.bf16.mxu0 %v3042_v50 }
0x1ac7   :  { %2890 = vmatpush3.bf16.msra.mxu1 %v2889_v43 }
0x1ac8   :  { %2857 = vmatpush3.bf16.msra.mxu0 %v2856_v13  ;;  %2891 = vmatprep.subr.bf16.mxu1 %v3042_v50 }
0x1ac9   :  { %2858 = vmatprep.subr.bf16.mxu0 %v3042_v50 }
0x1acb   :  { %2893 = vmatpush3.bf16.msra.mxu1 %v2892_v3 }
0x1acc   :  { %2860 = vmatpush3.bf16.msra.mxu0 %v2859_v27  ;;  %2894 = vmatprep.subr.bf16.mxu1 %v3042_v50 }
0x1acd   :  { %2861 = vmatprep.subr.bf16.mxu0 %v3042_v50 }
0x1acf   :  { %2896 = vmatpush3.bf16.msra.mxu1 %v2895_v10 }
0x1ad0   :  { %2863 = vmatpush3.bf16.msra.mxu0 %v2862_v31 }
0x1ad1   :  { %2864 = vmatprep.subr.bf16.mxu0 %v3042_v50 }
0x1ad4   :  { %2866 = vmatpush3.bf16.msra.mxu0 %v2865_v4 }
0x1ad5   :  { %2867 = vmatprep.subr.bf16.mxu0 %v3042_v50 }
0x1ad8   :  { %2869 = vmatpush3.bf16.msra.mxu0 %v2868_v37 }
0x1ad9   :  { %2870 = vmatprep.subr.bf16.mxu0 %v3042_v50 }
0x1adc   :  { %2872 = vmatpush3.bf16.msra.mxu0 %v2871_v44 }
0x1b92   :  { %v1975_v60 = vpop.f32.mrb[34].mxu0 }
0x1b93   :  { %v1976_v61 = vadd.f32 %v2270_v59, %v1975_v60  ;;  %v2711_v62 = vpop.f32.mrb[35].mxu0 }
0x1b95   :  { %v1979_v63 = vmax.f32 %v1976_v61, 0.0 }
0x1b97   :  { %2752 = vmatmul.mubr.f32.vlgmr.msra.gmra.mrb[36].mxu0 %v1979_v63 }
0x1c6a   :  { %v2134_v11 = vpop.f32.mrb[36].mxu0 }
0x1c6b   :  { %v2135_v14 = vadd.f32 %v2134_v11, %v2064_v6  ;;  %v2753_v15 = vpop.f32.mrb[37].mxu0 }
0x1c6d   :  { %v2143_v32 = vadd.f32 %v2272_v12, %v2135_v14 }
0x1c6f   :  { %v2144_v16 = vmax.f32 %v2143_v32, 0.0 }
0x1c71   :  { %2787 = vmatmul.mubr.f32.vlgmr.msra.gmra.mrb[40].mxu1 %v2144_v16 }
0x1d44   :  { %v2232_v18 = vpop.f32.mrb[40].mxu1 }
0x1d45   :  { %v2233_v19 = vadd.f32 %v2273_v17, %v2232_v18  ;;  %v2788_v21 = vpop.f32.mrb[41].mxu1 }
0x1d47   :  { %2236 = vst [vmem:[%s3488_s3] sm:$0xff] %v2233_v19 }
0x1d48   :  { %2241 = vsyncpa [#allocation3], 1 }

</bundles_post_ra>
